<compile_context>
chip_gen: v7x
topology: tpu7x:2x2x1
jax: 0.10.0
libtpu: 0.0.40
codegen_flags: <defaults>
</compile_context>

<pallas_src>
import functools

import jax
import jax.numpy as jnp
from jax import lax
from jax.experimental import pallas as pl
from jax.experimental.pallas import tpu as pltpu

_LANE = 128


def _dwconv3d_kernel(x_ref, w_ref, b_ref, o_ref, *,
                     kD, kH, kW, Dout, Hout, Wout, stride, dilation):
    """One (n, channel-tile) grid point, channels-last layout.

    x_ref : VMEM (Dp, Hp, Wp, CT)    padded input volume, channel tile on lanes
    w_ref : VMEM (kD*kH*kW, CT) f32  one weight row per tap
    b_ref : VMEM (1, CT) f32         per-channel bias
    o_ref : VMEM (Dout, Hout, Wout, CT)
    """
    sD, sH, sW = stride
    dD, dH, dW = dilation
    CT = o_ref.shape[-1]

    w = w_ref[...]                # (taps, CT) f32, read once, reused every plane
    bias = b_ref[0, :]            # (CT,) f32

    def h_slice(j):
        start = j * dH
        return pl.ds(start, Hout) if sH == 1 else pl.ds(start, Hout, stride=sH)

    def w_slice(l):
        start = l * dW
        return pl.ds(start, Wout) if sW == 1 else pl.ds(start, Wout, stride=sW)

    def d_body(od, carry):
        # One output-D plane at a time: bounded vreg pressure, lane-dense
        # (Wout sublanes x CT lanes) FMAs, one unmasked store per plane.
        acc = jnp.zeros((Hout, Wout, CT), jnp.float32)
        for i in range(kD):
            d_in = od * sD + i * dD              # leading-dim offset (free)
            for j in range(kH):
                hs = h_slice(j)
                for l in range(kW):
                    win = x_ref[d_in, hs, w_slice(l), :].astype(jnp.float32)
                    acc = acc + w[i * kH * kW + j * kW + l, :] * win
        o_ref[od] = (acc + bias).astype(o_ref.dtype)
        return carry

    lax.fori_loop(0, Dout, d_body, 0)


def depthwise_conv3d(x, weight, bias, stride=1, padding=0, dilation=1):
    """Depthwise 3D conv, groups == channels (matches conv_depthwise3d_cuda).

    x      : (N, C, D, H, W)
    weight : (C, 1, kD, kH, kW)
    bias   : (C,)
    Returns (N, C, Dout, Hout, Wout) in x.dtype.
    """
    N, C, D, H, W = x.shape
    Cw, one, kD, kH, kW = weight.shape
    assert Cw == C and one == 1, "depthwise conv requires weight (C, 1, k, k, k)"

    sD = sH = sW = int(stride)
    pD = pH = pW = int(padding)
    dD = dH = dW = int(dilation)

    # Channels-last so C lands on the 128-lane axis.
    xl = jnp.transpose(x, (0, 2, 3, 4, 1))      # (N, D, H, W, C)

    if padding:
        # TODO(synk): fold zero-padding into the kernel (masked edge taps /
        # clamped index_map) to avoid this extra HBM round trip when padding>0.
        xl = jnp.pad(xl, ((0, 0), (pD, pD), (pH, pH), (pW, pW), (0, 0)))
    _, Dp, Hp, Wp, _ = xl.shape

    # Pad channels up to a multiple of 128 (lane width) for dense vregs.
    Cpad = ((C + _LANE - 1) // _LANE) * _LANE
    if Cpad != C:
        xl = jnp.pad(xl, ((0, 0), (0, 0), (0, 0), (0, 0), (0, Cpad - C)))

    Dout = (Dp - dD * (kD - 1) - 1) // sD + 1
    Hout = (Hp - dH * (kH - 1) - 1) // sH + 1
    Wout = (Wp - dW * (kW - 1) - 1) // sW + 1

    taps = kD * kH * kW
    # (taps, Cpad) f32 weight rows; keep f32 even if x is lower precision.
    w_l = jnp.transpose(weight.reshape(C, taps), (1, 0)).astype(jnp.float32)
    w_l = jnp.pad(w_l, ((0, 0), (0, Cpad - C)))
    b_l = jnp.pad(bias.astype(jnp.float32), (0, Cpad - C)).reshape(1, Cpad)

    CT = _LANE
    n_ct = Cpad // CT

    kernel = functools.partial(
        _dwconv3d_kernel,
        kD=kD, kH=kH, kW=kW,
        Dout=Dout, Hout=Hout, Wout=Wout,
        stride=(sD, sH, sW), dilation=(dD, dH, dW))

    itemsize = jnp.dtype(x.dtype).itemsize
    in_block_bytes = Dp * Hp * Wp * CT * itemsize
    out_block_bytes = Dout * Hout * Wout * CT * itemsize
    vmem_need = (2 * (in_block_bytes + out_block_bytes)
                 + 2 * taps * CT * 4 + 2 * CT * 4 + (1 << 20))
    vmem_limit = None
    if vmem_need > 32 * 1024 * 1024:
        # TODO(synk): for very large volumes add D-tiling (halo'd blocks)
        # instead of only raising the VMEM limit; cap keeps v7x (64 MiB) safe.
        vmem_limit = int(min(vmem_need, 48 * 1024 * 1024))

    cost = pl.CostEstimate(
        flops=2 * taps * N * C * Dout * Hout * Wout,
        transcendentals=0,
        bytes_accessed=(N * Dp * Hp * Wp * Cpad * itemsize
                        + N * Dout * Hout * Wout * Cpad * itemsize
                        + taps * Cpad * 4 + Cpad * 4))

    out = pl.pallas_call(
        kernel,
        out_shape=jax.ShapeDtypeStruct((N, Dout, Hout, Wout, Cpad), x.dtype),
        grid=(N, n_ct),
        in_specs=[
            # Whole (padded) volume for one sample and one 128-channel tile.
            pl.BlockSpec((None, Dp, Hp, Wp, CT),
                         lambda n, ct: (n, 0, 0, 0, ct)),
            # Per-tap weight rows and bias: small f32 vectors in VMEM.
            pl.BlockSpec((taps, CT), lambda n, ct: (0, ct)),
            pl.BlockSpec((1, CT), lambda n, ct: (0, ct)),
        ],
        out_specs=pl.BlockSpec((None, Dout, Hout, Wout, CT),
                               lambda n, ct: (n, 0, 0, 0, ct)),
        compiler_params=pltpu.CompilerParams(
            dimension_semantics=("parallel", "parallel"),
            vmem_limit_bytes=vmem_limit),
        cost_estimate=cost,
    )(xl, w_l, b_l)

    # Drop channel padding, back to NCDHW.
    out = out[..., :C]
    return jnp.transpose(out, (0, 4, 1, 2, 3))


def make_radial_weight(out_channels, kernel_size, dtype=jnp.float32):
    """Reproduces self.R_ from DepthwiseConv3d.__init__."""
    k = kernel_size
    center = (k - 1) / 2.0
    idx = jnp.arange(k, dtype=dtype)
    off2 = (center - idx) ** 2
    R = jnp.sqrt(off2[:, None, None] + off2[None, :, None] + off2[None, None, :])
    R = R.reshape(1, 1, k, k, k)
    return jnp.broadcast_to(R, (out_channels, 1, k, k, k)).astype(dtype)


def reference_dwconv3d(x, weight, bias, stride=1, padding=0, dilation=1):
    """Plain-JAX reference (grouped conv with feature_group_count = C)."""
    C = x.shape[1]
    out = jax.lax.conv_general_dilated(
        x, weight,
        window_strides=(stride,) * 3,
        padding=[(padding, padding)] * 3,
        rhs_dilation=(dilation,) * 3,
        dimension_numbers=("NCDHW", "OIDHW", "NCDHW"),
        feature_group_count=C)
    return out + bias[None, :, None, None, None]


if __name__ == "__main__":
    # Module config (small, consistent with the forward pass):
    #   in_channels = out_channels = groups = 4, kernel_size = 3,
    #   stride = 1, padding = 0, dilation = 1, bias = True.
    N, C, D, H, W = 2, 4, 10, 10, 10
    K = 3

    key = jax.random.PRNGKey(0)
    kx, kb = jax.random.split(key)

    x = jax.random.normal(kx, (N, C, D, H, W), dtype=jnp.float32)
    weight = make_radial_weight(C, K)                       # fixed R_ tensor
    bias = 0.1 * jax.random.normal(kb, (C,), dtype=jnp.float32)

    out = depthwise_conv3d(x, weight, bias, stride=1, padding=0, dilation=1)
    out = jax.block_until_ready(out)

    ref = reference_dwconv3d(x, weight, bias, stride=1, padding=0, dilation=1)
    assert out.shape == (N, C, D - K + 1, H - K + 1, W - K + 1), out.shape
    assert jnp.allclose(out, ref, atol=1e-4, rtol=1e-4), (
        float(jnp.max(jnp.abs(out - ref))))

    print("KERNEL_OK")
</pallas_src>

<mosaic_0001>
module attributes {stable_mosaic.version = 11 : i64} {
  func.func @_dwconv3d_kernel(%arg0: i32, %arg1: i32, %arg2: memref<1x10x10x10x128xf32, #tpu.memory_space<vmem>>, %arg3: memref<27x128xf32, #tpu.memory_space<vmem>>, %arg4: memref<1x128xf32, #tpu.memory_space<vmem>>, %arg5: memref<1x8x8x8x128xf32, #tpu.memory_space<vmem>>) attributes {dimension_semantics = [#tpu.dimension_semantics<parallel>, #tpu.dimension_semantics<parallel>], iteration_bounds = array<i64: 2, 1>, scalar_prefetch = 0 : i64, scratch_operands = 0 : i64, tpu.core_type = #tpu.core_type<tc>, window_params = [{transform_indices = @transform_0, window_bounds = array<i64: 1, 10, 10, 10, 128>}, {transform_indices = @transform_1, window_bounds = array<i64: 27, 128>}, {transform_indices = @transform_2, window_bounds = array<i64: 1, 128>}, {transform_indices = @transform_3, window_bounds = array<i64: 1, 8, 8, 8, 128>}]} {
    %c0 = arith.constant 0 : index
    %c0_0 = arith.constant 0 : index
    %0 = vector.load %arg3[%c0, %c0_0] : memref<27x128xf32, #tpu.memory_space<vmem>>, vector<27x128xf32>
    %c0_1 = arith.constant 0 : index
    %c0_2 = arith.constant 0 : index
    %1 = vector.load %arg4[%c0_1, %c0_2] : memref<1x128xf32, #tpu.memory_space<vmem>>, vector<1x128xf32>
    %2 = vector.shape_cast %1 : vector<1x128xf32> to vector<128xf32>
    %c0_i32 = arith.constant 0 : i32
    %c8_i32 = arith.constant 8 : i32
    %3 = arith.addi %c0_i32, %c8_i32 : i32
    %c1_i32 = arith.constant 1 : i32
    scf.for %arg6 = %c0_i32 to %3 step %c1_i32  : i32 {
      %cst = arith.constant 0.000000e+00 : f32
      %4 = vector.broadcast %cst : f32 to vector<8x8x128xf32>
      %c1_i32_4 = arith.constant 1 : i32
      %5 = arith.muli %arg6, %c1_i32_4 : i32
      %c0_i32_5 = arith.constant 0 : i32
      %6 = arith.addi %5, %c0_i32_5 : i32
      %c0_6 = arith.constant 0 : index
      %7 = arith.index_cast %6 : i32 to index
      %c0_7 = arith.constant 0 : index
      %c0_8 = arith.constant 0 : index
      %c0_9 = arith.constant 0 : index
      %8 = vector.load %arg2[%c0_6, %7, %c0_7, %c0_8, %c0_9] : memref<1x10x10x10x128xf32, #tpu.memory_space<vmem>>, vector<1x1x8x8x128xf32>
      %9 = vector.shape_cast %8 : vector<1x1x8x8x128xf32> to vector<8x8x128xf32>
      %10 = vector.extract_strided_slice %0 {offsets = [0, 0], sizes = [1, 128], strides = [1, 1]} : vector<27x128xf32> to vector<1x128xf32>
      %11 = vector.shape_cast %10 : vector<1x128xf32> to vector<128xf32>
      %12 = vector.shape_cast %11 : vector<128xf32> to vector<1x1x128xf32>
      %13 = vector.broadcast %12 : vector<1x1x128xf32> to vector<8x8x128xf32>
      %14 = arith.mulf %13, %9 : vector<8x8x128xf32>
      %15 = arith.addf %4, %14 : vector<8x8x128xf32>
      %c0_10 = arith.constant 0 : index
      %16 = arith.index_cast %6 : i32 to index
      %c0_11 = arith.constant 0 : index
      %c1 = arith.constant 1 : index
      %c0_12 = arith.constant 0 : index
      %17 = vector.load %arg2[%c0_10, %16, %c0_11, %c1, %c0_12] : memref<1x10x10x10x128xf32, #tpu.memory_space<vmem>>, vector<1x1x8x8x128xf32>
      %18 = vector.shape_cast %17 : vector<1x1x8x8x128xf32> to vector<8x8x128xf32>
      %19 = vector.extract_strided_slice %0 {offsets = [1, 0], sizes = [1, 128], strides = [1, 1]} : vector<27x128xf32> to vector<1x128xf32>
      %20 = vector.shape_cast %19 : vector<1x128xf32> to vector<128xf32>
      %21 = vector.shape_cast %20 : vector<128xf32> to vector<1x1x128xf32>
      %22 = vector.broadcast %21 : vector<1x1x128xf32> to vector<8x8x128xf32>
      %23 = arith.mulf %22, %18 : vector<8x8x128xf32>
      %24 = arith.addf %15, %23 : vector<8x8x128xf32>
      %c0_13 = arith.constant 0 : index
      %25 = arith.index_cast %6 : i32 to index
      %c0_14 = arith.constant 0 : index
      %c2 = arith.constant 2 : index
      %c0_15 = arith.constant 0 : index
      %26 = vector.load %arg2[%c0_13, %25, %c0_14, %c2, %c0_15] : memref<1x10x10x10x128xf32, #tpu.memory_space<vmem>>, vector<1x1x8x8x128xf32>
      %27 = vector.shape_cast %26 : vector<1x1x8x8x128xf32> to vector<8x8x128xf32>
      %28 = vector.extract_strided_slice %0 {offsets = [2, 0], sizes = [1, 128], strides = [1, 1]} : vector<27x128xf32> to vector<1x128xf32>
      %29 = vector.shape_cast %28 : vector<1x128xf32> to vector<128xf32>
      %30 = vector.shape_cast %29 : vector<128xf32> to vector<1x1x128xf32>
      %31 = vector.broadcast %30 : vector<1x1x128xf32> to vector<8x8x128xf32>
      %32 = arith.mulf %31, %27 : vector<8x8x128xf32>
      %33 = arith.addf %24, %32 : vector<8x8x128xf32>
      %c0_16 = arith.constant 0 : index
      %34 = arith.index_cast %6 : i32 to index
      %c1_17 = arith.constant 1 : index
      %c0_18 = arith.constant 0 : index
      %c0_19 = arith.constant 0 : index
      %35 = vector.load %arg2[%c0_16, %34, %c1_17, %c0_18, %c0_19] : memref<1x10x10x10x128xf32, #tpu.memory_space<vmem>>, vector<1x1x8x8x128xf32>
      %36 = vector.shape_cast %35 : vector<1x1x8x8x128xf32> to vector<8x8x128xf32>
      %37 = vector.extract_strided_slice %0 {offsets = [3, 0], sizes = [1, 128], strides = [1, 1]} : vector<27x128xf32> to vector<1x128xf32>
      %38 = vector.shape_cast %37 : vector<1x128xf32> to vector<128xf32>
      %39 = vector.shape_cast %38 : vector<128xf32> to vector<1x1x128xf32>
      %40 = vector.broadcast %39 : vector<1x1x128xf32> to vector<8x8x128xf32>
      %41 = arith.mulf %40, %36 : vector<8x8x128xf32>
      %42 = arith.addf %33, %41 : vector<8x8x128xf32>
      %c0_20 = arith.constant 0 : index
      %43 = arith.index_cast %6 : i32 to index
      %c1_21 = arith.constant 1 : index
      %c1_22 = arith.constant 1 : index
      %c0_23 = arith.constant 0 : index
      %44 = vector.load %arg2[%c0_20, %43, %c1_21, %c1_22, %c0_23] : memref<1x10x10x10x128xf32, #tpu.memory_space<vmem>>, vector<1x1x8x8x128xf32>
      %45 = vector.shape_cast %44 : vector<1x1x8x8x128xf32> to vector<8x8x128xf32>
      %46 = vector.extract_strided_slice %0 {offsets = [4, 0], sizes = [1, 128], strides = [1, 1]} : vector<27x128xf32> to vector<1x128xf32>
      %47 = vector.shape_cast %46 : vector<1x128xf32> to vector<128xf32>
      %48 = vector.shape_cast %47 : vector<128xf32> to vector<1x1x128xf32>
      %49 = vector.broadcast %48 : vector<1x1x128xf32> to vector<8x8x128xf32>
      %50 = arith.mulf %49, %45 : vector<8x8x128xf32>
      %51 = arith.addf %42, %50 : vector<8x8x128xf32>
      %c0_24 = arith.constant 0 : index
      %52 = arith.index_cast %6 : i32 to index
      %c1_25 = arith.constant 1 : index
      %c2_26 = arith.constant 2 : index
      %c0_27 = arith.constant 0 : index
      %53 = vector.load %arg2[%c0_24, %52, %c1_25, %c2_26, %c0_27] : memref<1x10x10x10x128xf32, #tpu.memory_space<vmem>>, vector<1x1x8x8x128xf32>
      %54 = vector.shape_cast %53 : vector<1x1x8x8x128xf32> to vector<8x8x128xf32>
      %55 = vector.extract_strided_slice %0 {offsets = [5, 0], sizes = [1, 128], strides = [1, 1]} : vector<27x128xf32> to vector<1x128xf32>
      %56 = vector.shape_cast %55 : vector<1x128xf32> to vector<128xf32>
      %57 = vector.shape_cast %56 : vector<128xf32> to vector<1x1x128xf32>
      %58 = vector.broadcast %57 : vector<1x1x128xf32> to vector<8x8x128xf32>
      %59 = arith.mulf %58, %54 : vector<8x8x128xf32>
      %60 = arith.addf %51, %59 : vector<8x8x128xf32>
      %c0_28 = arith.constant 0 : index
      %61 = arith.index_cast %6 : i32 to index
      %c2_29 = arith.constant 2 : index
      %c0_30 = arith.constant 0 : index
      %c0_31 = arith.constant 0 : index
      %62 = vector.load %arg2[%c0_28, %61, %c2_29, %c0_30, %c0_31] : memref<1x10x10x10x128xf32, #tpu.memory_space<vmem>>, vector<1x1x8x8x128xf32>
      %63 = vector.shape_cast %62 : vector<1x1x8x8x128xf32> to vector<8x8x128xf32>
      %64 = vector.extract_strided_slice %0 {offsets = [6, 0], sizes = [1, 128], strides = [1, 1]} : vector<27x128xf32> to vector<1x128xf32>
      %65 = vector.shape_cast %64 : vector<1x128xf32> to vector<128xf32>
      %66 = vector.shape_cast %65 : vector<128xf32> to vector<1x1x128xf32>
      %67 = vector.broadcast %66 : vector<1x1x128xf32> to vector<8x8x128xf32>
      %68 = arith.mulf %67, %63 : vector<8x8x128xf32>
      %69 = arith.addf %60, %68 : vector<8x8x128xf32>
      %c0_32 = arith.constant 0 : index
      %70 = arith.index_cast %6 : i32 to index
      %c2_33 = arith.constant 2 : index
      %c1_34 = arith.constant 1 : index
      %c0_35 = arith.constant 0 : index
      %71 = vector.load %arg2[%c0_32, %70, %c2_33, %c1_34, %c0_35] : memref<1x10x10x10x128xf32, #tpu.memory_space<vmem>>, vector<1x1x8x8x128xf32>
      %72 = vector.shape_cast %71 : vector<1x1x8x8x128xf32> to vector<8x8x128xf32>
      %73 = vector.extract_strided_slice %0 {offsets = [7, 0], sizes = [1, 128], strides = [1, 1]} : vector<27x128xf32> to vector<1x128xf32>
      %74 = vector.shape_cast %73 : vector<1x128xf32> to vector<128xf32>
      %75 = vector.shape_cast %74 : vector<128xf32> to vector<1x1x128xf32>
      %76 = vector.broadcast %75 : vector<1x1x128xf32> to vector<8x8x128xf32>
      %77 = arith.mulf %76, %72 : vector<8x8x128xf32>
      %78 = arith.addf %69, %77 : vector<8x8x128xf32>
      %c0_36 = arith.constant 0 : index
      %79 = arith.index_cast %6 : i32 to index
      %c2_37 = arith.constant 2 : index
      %c2_38 = arith.constant 2 : index
      %c0_39 = arith.constant 0 : index
      %80 = vector.load %arg2[%c0_36, %79, %c2_37, %c2_38, %c0_39] : memref<1x10x10x10x128xf32, #tpu.memory_space<vmem>>, vector<1x1x8x8x128xf32>
      %81 = vector.shape_cast %80 : vector<1x1x8x8x128xf32> to vector<8x8x128xf32>
      %82 = vector.extract_strided_slice %0 {offsets = [8, 0], sizes = [1, 128], strides = [1, 1]} : vector<27x128xf32> to vector<1x128xf32>
      %83 = vector.shape_cast %82 : vector<1x128xf32> to vector<128xf32>
      %84 = vector.shape_cast %83 : vector<128xf32> to vector<1x1x128xf32>
      %85 = vector.broadcast %84 : vector<1x1x128xf32> to vector<8x8x128xf32>
      %86 = arith.mulf %85, %81 : vector<8x8x128xf32>
      %87 = arith.addf %78, %86 : vector<8x8x128xf32>
      %c1_i32_40 = arith.constant 1 : i32
      %88 = arith.muli %arg6, %c1_i32_40 : i32
      %c1_i32_41 = arith.constant 1 : i32
      %89 = arith.addi %88, %c1_i32_41 : i32
      %c0_42 = arith.constant 0 : index
      %90 = arith.index_cast %89 : i32 to index
      %c0_43 = arith.constant 0 : index
      %c0_44 = arith.constant 0 : index
      %c0_45 = arith.constant 0 : index
      %91 = vector.load %arg2[%c0_42, %90, %c0_43, %c0_44, %c0_45] : memref<1x10x10x10x128xf32, #tpu.memory_space<vmem>>, vector<1x1x8x8x128xf32>
      %92 = vector.shape_cast %91 : vector<1x1x8x8x128xf32> to vector<8x8x128xf32>
      %93 = vector.extract_strided_slice %0 {offsets = [9, 0], sizes = [1, 128], strides = [1, 1]} : vector<27x128xf32> to vector<1x128xf32>
      %94 = vector.shape_cast %93 : vector<1x128xf32> to vector<128xf32>
      %95 = vector.shape_cast %94 : vector<128xf32> to vector<1x1x128xf32>
      %96 = vector.broadcast %95 : vector<1x1x128xf32> to vector<8x8x128xf32>
      %97 = arith.mulf %96, %92 : vector<8x8x128xf32>
      %98 = arith.addf %87, %97 : vector<8x8x128xf32>
      %c0_46 = arith.constant 0 : index
      %99 = arith.index_cast %89 : i32 to index
      %c0_47 = arith.constant 0 : index
      %c1_48 = arith.constant 1 : index
      %c0_49 = arith.constant 0 : index
      %100 = vector.load %arg2[%c0_46, %99, %c0_47, %c1_48, %c0_49] : memref<1x10x10x10x128xf32, #tpu.memory_space<vmem>>, vector<1x1x8x8x128xf32>
      %101 = vector.shape_cast %100 : vector<1x1x8x8x128xf32> to vector<8x8x128xf32>
      %102 = vector.extract_strided_slice %0 {offsets = [10, 0], sizes = [1, 128], strides = [1, 1]} : vector<27x128xf32> to vector<1x128xf32>
      %103 = vector.shape_cast %102 : vector<1x128xf32> to vector<128xf32>
      %104 = vector.shape_cast %103 : vector<128xf32> to vector<1x1x128xf32>
      %105 = vector.broadcast %104 : vector<1x1x128xf32> to vector<8x8x128xf32>
      %106 = arith.mulf %105, %101 : vector<8x8x128xf32>
      %107 = arith.addf %98, %106 : vector<8x8x128xf32>
      %c0_50 = arith.constant 0 : index
      %108 = arith.index_cast %89 : i32 to index
      %c0_51 = arith.constant 0 : index
      %c2_52 = arith.constant 2 : index
      %c0_53 = arith.constant 0 : index
      %109 = vector.load %arg2[%c0_50, %108, %c0_51, %c2_52, %c0_53] : memref<1x10x10x10x128xf32, #tpu.memory_space<vmem>>, vector<1x1x8x8x128xf32>
      %110 = vector.shape_cast %109 : vector<1x1x8x8x128xf32> to vector<8x8x128xf32>
      %111 = vector.extract_strided_slice %0 {offsets = [11, 0], sizes = [1, 128], strides = [1, 1]} : vector<27x128xf32> to vector<1x128xf32>
      %112 = vector.shape_cast %111 : vector<1x128xf32> to vector<128xf32>
      %113 = vector.shape_cast %112 : vector<128xf32> to vector<1x1x128xf32>
      %114 = vector.broadcast %113 : vector<1x1x128xf32> to vector<8x8x128xf32>
      %115 = arith.mulf %114, %110 : vector<8x8x128xf32>
      %116 = arith.addf %107, %115 : vector<8x8x128xf32>
      %c0_54 = arith.constant 0 : index
      %117 = arith.index_cast %89 : i32 to index
      %c1_55 = arith.constant 1 : index
      %c0_56 = arith.constant 0 : index
      %c0_57 = arith.constant 0 : index
      %118 = vector.load %arg2[%c0_54, %117, %c1_55, %c0_56, %c0_57] : memref<1x10x10x10x128xf32, #tpu.memory_space<vmem>>, vector<1x1x8x8x128xf32>
      %119 = vector.shape_cast %118 : vector<1x1x8x8x128xf32> to vector<8x8x128xf32>
      %120 = vector.extract_strided_slice %0 {offsets = [12, 0], sizes = [1, 128], strides = [1, 1]} : vector<27x128xf32> to vector<1x128xf32>
      %121 = vector.shape_cast %120 : vector<1x128xf32> to vector<128xf32>
      %122 = vector.shape_cast %121 : vector<128xf32> to vector<1x1x128xf32>
      %123 = vector.broadcast %122 : vector<1x1x128xf32> to vector<8x8x128xf32>
      %124 = arith.mulf %123, %119 : vector<8x8x128xf32>
      %125 = arith.addf %116, %124 : vector<8x8x128xf32>
      %c0_58 = arith.constant 0 : index
      %126 = arith.index_cast %89 : i32 to index
      %c1_59 = arith.constant 1 : index
      %c1_60 = arith.constant 1 : index
      %c0_61 = arith.constant 0 : index
      %127 = vector.load %arg2[%c0_58, %126, %c1_59, %c1_60, %c0_61] : memref<1x10x10x10x128xf32, #tpu.memory_space<vmem>>, vector<1x1x8x8x128xf32>
      %128 = vector.shape_cast %127 : vector<1x1x8x8x128xf32> to vector<8x8x128xf32>
      %129 = vector.extract_strided_slice %0 {offsets = [13, 0], sizes = [1, 128], strides = [1, 1]} : vector<27x128xf32> to vector<1x128xf32>
      %130 = vector.shape_cast %129 : vector<1x128xf32> to vector<128xf32>
      %131 = vector.shape_cast %130 : vector<128xf32> to vector<1x1x128xf32>
      %132 = vector.broadcast %131 : vector<1x1x128xf32> to vector<8x8x128xf32>
      %133 = arith.mulf %132, %128 : vector<8x8x128xf32>
      %134 = arith.addf %125, %133 : vector<8x8x128xf32>
      %c0_62 = arith.constant 0 : index
      %135 = arith.index_cast %89 : i32 to index
      %c1_63 = arith.constant 1 : index
      %c2_64 = arith.constant 2 : index
      %c0_65 = arith.constant 0 : index
      %136 = vector.load %arg2[%c0_62, %135, %c1_63, %c2_64, %c0_65] : memref<1x10x10x10x128xf32, #tpu.memory_space<vmem>>, vector<1x1x8x8x128xf32>
      %137 = vector.shape_cast %136 : vector<1x1x8x8x128xf32> to vector<8x8x128xf32>
      %138 = vector.extract_strided_slice %0 {offsets = [14, 0], sizes = [1, 128], strides = [1, 1]} : vector<27x128xf32> to vector<1x128xf32>
      %139 = vector.shape_cast %138 : vector<1x128xf32> to vector<128xf32>
      %140 = vector.shape_cast %139 : vector<128xf32> to vector<1x1x128xf32>
      %141 = vector.broadcast %140 : vector<1x1x128xf32> to vector<8x8x128xf32>
      %142 = arith.mulf %141, %137 : vector<8x8x128xf32>
      %143 = arith.addf %134, %142 : vector<8x8x128xf32>
      %c0_66 = arith.constant 0 : index
      %144 = arith.index_cast %89 : i32 to index
      %c2_67 = arith.constant 2 : index
      %c0_68 = arith.constant 0 : index
      %c0_69 = arith.constant 0 : index
      %145 = vector.load %arg2[%c0_66, %144, %c2_67, %c0_68, %c0_69] : memref<1x10x10x10x128xf32, #tpu.memory_space<vmem>>, vector<1x1x8x8x128xf32>
      %146 = vector.shape_cast %145 : vector<1x1x8x8x128xf32> to vector<8x8x128xf32>
      %147 = vector.extract_strided_slice %0 {offsets = [15, 0], sizes = [1, 128], strides = [1, 1]} : vector<27x128xf32> to vector<1x128xf32>
      %148 = vector.shape_cast %147 : vector<1x128xf32> to vector<128xf32>
      %149 = vector.shape_cast %148 : vector<128xf32> to vector<1x1x128xf32>
      %150 = vector.broadcast %149 : vector<1x1x128xf32> to vector<8x8x128xf32>
      %151 = arith.mulf %150, %146 : vector<8x8x128xf32>
      %152 = arith.addf %143, %151 : vector<8x8x128xf32>
      %c0_70 = arith.constant 0 : index
      %153 = arith.index_cast %89 : i32 to index
      %c2_71 = arith.constant 2 : index
      %c1_72 = arith.constant 1 : index
      %c0_73 = arith.constant 0 : index
      %154 = vector.load %arg2[%c0_70, %153, %c2_71, %c1_72, %c0_73] : memref<1x10x10x10x128xf32, #tpu.memory_space<vmem>>, vector<1x1x8x8x128xf32>
      %155 = vector.shape_cast %154 : vector<1x1x8x8x128xf32> to vector<8x8x128xf32>
      %156 = vector.extract_strided_slice %0 {offsets = [16, 0], sizes = [1, 128], strides = [1, 1]} : vector<27x128xf32> to vector<1x128xf32>
      %157 = vector.shape_cast %156 : vector<1x128xf32> to vector<128xf32>
      %158 = vector.shape_cast %157 : vector<128xf32> to vector<1x1x128xf32>
      %159 = vector.broadcast %158 : vector<1x1x128xf32> to vector<8x8x128xf32>
      %160 = arith.mulf %159, %155 : vector<8x8x128xf32>
      %161 = arith.addf %152, %160 : vector<8x8x128xf32>
      %c0_74 = arith.constant 0 : index
      %162 = arith.index_cast %89 : i32 to index
      %c2_75 = arith.constant 2 : index
      %c2_76 = arith.constant 2 : index
      %c0_77 = arith.constant 0 : index
      %163 = vector.load %arg2[%c0_74, %162, %c2_75, %c2_76, %c0_77] : memref<1x10x10x10x128xf32, #tpu.memory_space<vmem>>, vector<1x1x8x8x128xf32>
      %164 = vector.shape_cast %163 : vector<1x1x8x8x128xf32> to vector<8x8x128xf32>
      %165 = vector.extract_strided_slice %0 {offsets = [17, 0], sizes = [1, 128], strides = [1, 1]} : vector<27x128xf32> to vector<1x128xf32>
      %166 = vector.shape_cast %165 : vector<1x128xf32> to vector<128xf32>
      %167 = vector.shape_cast %166 : vector<128xf32> to vector<1x1x128xf32>
      %168 = vector.broadcast %167 : vector<1x1x128xf32> to vector<8x8x128xf32>
      %169 = arith.mulf %168, %164 : vector<8x8x128xf32>
      %170 = arith.addf %161, %169 : vector<8x8x128xf32>
      %c1_i32_78 = arith.constant 1 : i32
      %171 = arith.muli %arg6, %c1_i32_78 : i32
      %c2_i32 = arith.constant 2 : i32
      %172 = arith.addi %171, %c2_i32 : i32
      %c0_79 = arith.constant 0 : index
      %173 = arith.index_cast %172 : i32 to index
      %c0_80 = arith.constant 0 : index
      %c0_81 = arith.constant 0 : index
      %c0_82 = arith.constant 0 : index
      %174 = vector.load %arg2[%c0_79, %173, %c0_80, %c0_81, %c0_82] : memref<1x10x10x10x128xf32, #tpu.memory_space<vmem>>, vector<1x1x8x8x128xf32>
      %175 = vector.shape_cast %174 : vector<1x1x8x8x128xf32> to vector<8x8x128xf32>
      %176 = vector.extract_strided_slice %0 {offsets = [18, 0], sizes = [1, 128], strides = [1, 1]} : vector<27x128xf32> to vector<1x128xf32>
      %177 = vector.shape_cast %176 : vector<1x128xf32> to vector<128xf32>
      %178 = vector.shape_cast %177 : vector<128xf32> to vector<1x1x128xf32>
      %179 = vector.broadcast %178 : vector<1x1x128xf32> to vector<8x8x128xf32>
      %180 = arith.mulf %179, %175 : vector<8x8x128xf32>
      %181 = arith.addf %170, %180 : vector<8x8x128xf32>
      %c0_83 = arith.constant 0 : index
      %182 = arith.index_cast %172 : i32 to index
      %c0_84 = arith.constant 0 : index
      %c1_85 = arith.constant 1 : index
      %c0_86 = arith.constant 0 : index
      %183 = vector.load %arg2[%c0_83, %182, %c0_84, %c1_85, %c0_86] : memref<1x10x10x10x128xf32, #tpu.memory_space<vmem>>, vector<1x1x8x8x128xf32>
      %184 = vector.shape_cast %183 : vector<1x1x8x8x128xf32> to vector<8x8x128xf32>
      %185 = vector.extract_strided_slice %0 {offsets = [19, 0], sizes = [1, 128], strides = [1, 1]} : vector<27x128xf32> to vector<1x128xf32>
      %186 = vector.shape_cast %185 : vector<1x128xf32> to vector<128xf32>
      %187 = vector.shape_cast %186 : vector<128xf32> to vector<1x1x128xf32>
      %188 = vector.broadcast %187 : vector<1x1x128xf32> to vector<8x8x128xf32>
      %189 = arith.mulf %188, %184 : vector<8x8x128xf32>
      %190 = arith.addf %181, %189 : vector<8x8x128xf32>
      %c0_87 = arith.constant 0 : index
      %191 = arith.index_cast %172 : i32 to index
      %c0_88 = arith.constant 0 : index
      %c2_89 = arith.constant 2 : index
      %c0_90 = arith.constant 0 : index
      %192 = vector.load %arg2[%c0_87, %191, %c0_88, %c2_89, %c0_90] : memref<1x10x10x10x128xf32, #tpu.memory_space<vmem>>, vector<1x1x8x8x128xf32>
      %193 = vector.shape_cast %192 : vector<1x1x8x8x128xf32> to vector<8x8x128xf32>
      %194 = vector.extract_strided_slice %0 {offsets = [20, 0], sizes = [1, 128], strides = [1, 1]} : vector<27x128xf32> to vector<1x128xf32>
      %195 = vector.shape_cast %194 : vector<1x128xf32> to vector<128xf32>
      %196 = vector.shape_cast %195 : vector<128xf32> to vector<1x1x128xf32>
      %197 = vector.broadcast %196 : vector<1x1x128xf32> to vector<8x8x128xf32>
      %198 = arith.mulf %197, %193 : vector<8x8x128xf32>
      %199 = arith.addf %190, %198 : vector<8x8x128xf32>
      %c0_91 = arith.constant 0 : index
      %200 = arith.index_cast %172 : i32 to index
      %c1_92 = arith.constant 1 : index
      %c0_93 = arith.constant 0 : index
      %c0_94 = arith.constant 0 : index
      %201 = vector.load %arg2[%c0_91, %200, %c1_92, %c0_93, %c0_94] : memref<1x10x10x10x128xf32, #tpu.memory_space<vmem>>, vector<1x1x8x8x128xf32>
      %202 = vector.shape_cast %201 : vector<1x1x8x8x128xf32> to vector<8x8x128xf32>
      %203 = vector.extract_strided_slice %0 {offsets = [21, 0], sizes = [1, 128], strides = [1, 1]} : vector<27x128xf32> to vector<1x128xf32>
      %204 = vector.shape_cast %203 : vector<1x128xf32> to vector<128xf32>
      %205 = vector.shape_cast %204 : vector<128xf32> to vector<1x1x128xf32>
      %206 = vector.broadcast %205 : vector<1x1x128xf32> to vector<8x8x128xf32>
      %207 = arith.mulf %206, %202 : vector<8x8x128xf32>
      %208 = arith.addf %199, %207 : vector<8x8x128xf32>
      %c0_95 = arith.constant 0 : index
      %209 = arith.index_cast %172 : i32 to index
      %c1_96 = arith.constant 1 : index
      %c1_97 = arith.constant 1 : index
      %c0_98 = arith.constant 0 : index
      %210 = vector.load %arg2[%c0_95, %209, %c1_96, %c1_97, %c0_98] : memref<1x10x10x10x128xf32, #tpu.memory_space<vmem>>, vector<1x1x8x8x128xf32>
      %211 = vector.shape_cast %210 : vector<1x1x8x8x128xf32> to vector<8x8x128xf32>
      %212 = vector.extract_strided_slice %0 {offsets = [22, 0], sizes = [1, 128], strides = [1, 1]} : vector<27x128xf32> to vector<1x128xf32>
      %213 = vector.shape_cast %212 : vector<1x128xf32> to vector<128xf32>
      %214 = vector.shape_cast %213 : vector<128xf32> to vector<1x1x128xf32>
      %215 = vector.broadcast %214 : vector<1x1x128xf32> to vector<8x8x128xf32>
      %216 = arith.mulf %215, %211 : vector<8x8x128xf32>
      %217 = arith.addf %208, %216 : vector<8x8x128xf32>
      %c0_99 = arith.constant 0 : index
      %218 = arith.index_cast %172 : i32 to index
      %c1_100 = arith.constant 1 : index
      %c2_101 = arith.constant 2 : index
      %c0_102 = arith.constant 0 : index
      %219 = vector.load %arg2[%c0_99, %218, %c1_100, %c2_101, %c0_102] : memref<1x10x10x10x128xf32, #tpu.memory_space<vmem>>, vector<1x1x8x8x128xf32>
      %220 = vector.shape_cast %219 : vector<1x1x8x8x128xf32> to vector<8x8x128xf32>
      %221 = vector.extract_strided_slice %0 {offsets = [23, 0], sizes = [1, 128], strides = [1, 1]} : vector<27x128xf32> to vector<1x128xf32>
      %222 = vector.shape_cast %221 : vector<1x128xf32> to vector<128xf32>
      %223 = vector.shape_cast %222 : vector<128xf32> to vector<1x1x128xf32>
      %224 = vector.broadcast %223 : vector<1x1x128xf32> to vector<8x8x128xf32>
      %225 = arith.mulf %224, %220 : vector<8x8x128xf32>
      %226 = arith.addf %217, %225 : vector<8x8x128xf32>
      %c0_103 = arith.constant 0 : index
      %227 = arith.index_cast %172 : i32 to index
      %c2_104 = arith.constant 2 : index
      %c0_105 = arith.constant 0 : index
      %c0_106 = arith.constant 0 : index
      %228 = vector.load %arg2[%c0_103, %227, %c2_104, %c0_105, %c0_106] : memref<1x10x10x10x128xf32, #tpu.memory_space<vmem>>, vector<1x1x8x8x128xf32>
      %229 = vector.shape_cast %228 : vector<1x1x8x8x128xf32> to vector<8x8x128xf32>
      %230 = vector.extract_strided_slice %0 {offsets = [24, 0], sizes = [1, 128], strides = [1, 1]} : vector<27x128xf32> to vector<1x128xf32>
      %231 = vector.shape_cast %230 : vector<1x128xf32> to vector<128xf32>
      %232 = vector.shape_cast %231 : vector<128xf32> to vector<1x1x128xf32>
      %233 = vector.broadcast %232 : vector<1x1x128xf32> to vector<8x8x128xf32>
      %234 = arith.mulf %233, %229 : vector<8x8x128xf32>
      %235 = arith.addf %226, %234 : vector<8x8x128xf32>
      %c0_107 = arith.constant 0 : index
      %236 = arith.index_cast %172 : i32 to index
      %c2_108 = arith.constant 2 : index
      %c1_109 = arith.constant 1 : index
      %c0_110 = arith.constant 0 : index
      %237 = vector.load %arg2[%c0_107, %236, %c2_108, %c1_109, %c0_110] : memref<1x10x10x10x128xf32, #tpu.memory_space<vmem>>, vector<1x1x8x8x128xf32>
      %238 = vector.shape_cast %237 : vector<1x1x8x8x128xf32> to vector<8x8x128xf32>
      %239 = vector.extract_strided_slice %0 {offsets = [25, 0], sizes = [1, 128], strides = [1, 1]} : vector<27x128xf32> to vector<1x128xf32>
      %240 = vector.shape_cast %239 : vector<1x128xf32> to vector<128xf32>
      %241 = vector.shape_cast %240 : vector<128xf32> to vector<1x1x128xf32>
      %242 = vector.broadcast %241 : vector<1x1x128xf32> to vector<8x8x128xf32>
      %243 = arith.mulf %242, %238 : vector<8x8x128xf32>
      %244 = arith.addf %235, %243 : vector<8x8x128xf32>
      %c0_111 = arith.constant 0 : index
      %245 = arith.index_cast %172 : i32 to index
      %c2_112 = arith.constant 2 : index
      %c2_113 = arith.constant 2 : index
      %c0_114 = arith.constant 0 : index
      %246 = vector.load %arg2[%c0_111, %245, %c2_112, %c2_113, %c0_114] : memref<1x10x10x10x128xf32, #tpu.memory_space<vmem>>, vector<1x1x8x8x128xf32>
      %247 = vector.shape_cast %246 : vector<1x1x8x8x128xf32> to vector<8x8x128xf32>
      %248 = vector.extract_strided_slice %0 {offsets = [26, 0], sizes = [1, 128], strides = [1, 1]} : vector<27x128xf32> to vector<1x128xf32>
      %249 = vector.shape_cast %248 : vector<1x128xf32> to vector<128xf32>
      %250 = vector.shape_cast %249 : vector<128xf32> to vector<1x1x128xf32>
      %251 = vector.broadcast %250 : vector<1x1x128xf32> to vector<8x8x128xf32>
      %252 = arith.mulf %251, %247 : vector<8x8x128xf32>
      %253 = arith.addf %244, %252 : vector<8x8x128xf32>
      %254 = vector.shape_cast %2 : vector<128xf32> to vector<1x1x128xf32>
      %255 = vector.broadcast %254 : vector<1x1x128xf32> to vector<8x8x128xf32>
      %256 = arith.addf %253, %255 : vector<8x8x128xf32>
      %c0_115 = arith.constant 0 : index
      %257 = arith.index_cast %arg6 : i32 to index
      %c0_116 = arith.constant 0 : index
      %c0_117 = arith.constant 0 : index
      %c0_118 = arith.constant 0 : index
      %258 = vector.load %arg5[%c0_115, %257, %c0_116, %c0_117, %c0_118] : memref<1x8x8x8x128xf32, #tpu.memory_space<vmem>>, vector<1x1x8x8x128xf32>
      %259 = vector.shape_cast %258 : vector<1x1x8x8x128xf32> to vector<8x8x128xf32>
      %260 = vector.shape_cast %256 : vector<8x8x128xf32> to vector<1x1x8x8x128xf32>
      tpu.vector_store %arg5[%c0_115, %257, %c0_116, %c0_117, %c0_118], %260 {strides = array<i32>} : memref<1x8x8x8x128xf32, #tpu.memory_space<vmem>>, vector<1x1x8x8x128xf32>,
    }
    %c8_i32_3 = arith.constant 8 : i32
    return
  }
  func.func @transform_0(%arg0: i32, %arg1: i32) -> (i32, i32, i32, i32, i32) {
    %c0_i32 = arith.constant 0 : i32
    %c0_i32_0 = arith.constant 0 : i32
    %c0_i32_1 = arith.constant 0 : i32
    %c0_i32_2 = arith.constant 0 : i32
    return %arg0, %c0_i32, %c0_i32_0, %c0_i32_1, %arg1 : i32, i32, i32, i32, i32
  }
  func.func @transform_1(%arg0: i32, %arg1: i32) -> (i32, i32) {
    %c0_i32 = arith.constant 0 : i32
    %c0_i32_0 = arith.constant 0 : i32
    return %c0_i32, %arg1 : i32, i32
  }
  func.func @transform_2(%arg0: i32, %arg1: i32) -> (i32, i32) {
    %c0_i32 = arith.constant 0 : i32
    %c0_i32_0 = arith.constant 0 : i32
    return %c0_i32, %arg1 : i32, i32
  }
  func.func @transform_3(%arg0: i32, %arg1: i32) -> (i32, i32, i32, i32, i32) {
    %c0_i32 = arith.constant 0 : i32
    %c0_i32_0 = arith.constant 0 : i32
    %c0_i32_1 = arith.constant 0 : i32
    %c0_i32_2 = arith.constant 0 : i32
    return %arg0, %c0_i32, %c0_i32_0, %c0_i32_1, %arg1 : i32, i32, i32, i32, i32
  }
}

</mosaic_0001>

<bundles_post_ra>
// kernel: tpu_custom_call.1
= control target key start
LH: loop header
LB: loop body
LE: loop exit
PB: predicated region body
PF: predicated region fallthrough
CT: control target
= control target key end

     0   :  { %8 = vsyncpa [#allocation3], 0  ;;  %s2387_s0 = inlined_call_operand.vmem [shape: f32[2,10,10,10,128], index: 0, kind: input, shape index: {}]   ;;  %s2388_s1 = inlined_call_operand.vmem [shape: f32[27,128], index: 1, kind: input, shape index: {}]   ;;  %s2389_s2 = inlined_call_operand.vmem [shape: f32[1,128], index: 2, kind: input, shape index: {}]   ;;  %s2390_s3 = inlined_call_operand.hbm [shape: f32[2,8,8,8,128], index: 3, kind: output, shape index: {}]  }
   0x1   :  { %10 = vsyncpa [#allocation3 + $0x1], 0  ;;  %s1575_s12 = smov 0   ;;  %s1577_s13 = smov 0  }
   0x2   :  { %s1579_s14 = smov 0   ;;  %s1581_s15 = smov 0  }
   0x3   :  { %s1583_s16 = smov 0   ;;  %s1585_s17 = smov 0  }
   0x4 LB: > { %s1189_s18 = sadd.s32 4294967295, %s1546_s17   ;;  %s1190_s19 = sadd.s32 4294967294, %s1546_s17   ;;  %s1546_s17 = sphi %s1585_s17, %s16_s17   ;;  %s1542_s16 = sphi %s1583_s16, %s2406_s16   ;;  %s1538_s15 = sphi %s1581_s15, %s2405_s15   ;;  %s1534_s14 = sphi %s1579_s14, %s2404_s14   ;;  %s1530_s13 = sphi %s1577_s13, %s2403_s13   ;;  %s1526_s12 = sphi %s1575_s12, %s2402_s12  }
   0x5   : > { %s28_s20 = sadd.s32 1, %s1542_s16  ;;  %s117_s21 = sadd.s32 1, %s1534_s14 }
   0x6   : > { %p30_p0 = scmp.ge.s32.totalorder %s28_s20, 2  ;;  %p127_p1 = scmp.ne.s32.totalorder %s1534_s14, %s1530_s13 }
   0x7   : > { %p128_p2 = scmp.eq.s32.totalorder %s1189_s18, 1  ;;  %p133_p3 = scmp.ne.s32.totalorder %s1530_s13, %s1526_s12 }
   0x8   : > { %s2408_s20 = smov (%p30_p0, %s28_s20), 0  ;;  %p134_p5 = scmp.eq.s32.totalorder %s1190_s19, 1 }
   0x9   : > { %p1615_p4 = por %p128_p2, %p127_p1  ;;  %s112_s23 = ssub.s32 %s1542_s16, %s2408_s20 }
   0xa   : > { %p1195_p6 = scmp.ge.s32.totalorder %s1546_s17, 1  ;;  %p115_p7 = scmp.eq.s32.totalorder %s112_s23, 0 }
   0xb   : > { %p1622_p8 = por %p134_p5, %p133_p3  ;;  %p176_p9 = scmp.lt.s32.totalorder %s1546_s17, 3 }
   0xc   : > { %s1628_s25 = scalar_select %p115_p7, %s1534_s14, %s117_s21  }
   0xd   : > { %p177_p10 = pnand %p1195_p6, %p176_p9 }
   0xf   : > { %180 = sbr.rel (%p177_p10) target bundleno = 168 (0xa8), region = 32 }
  0x16   : > { %s207_s26 = sand.u32 1, %s1530_s13   ;;  %p210_p11 = scmp.lt.s32.totalorder %s1538_s15, 1  ;;  %v1635_v0 = vld [vmem:[%s2388_s1] sm:$0xff]  ;;  %v1640_v1 = vld [vmem:[%s2388_s1 + $0x8] sm:$0xff]  ;;  %v1645_v2 = vld [vmem:[%s2388_s1 + $0x10] sm:$0xff] }
  0x17   : > { %2396 = vst [vmem:[#allocation5_spill] sm:$0xff] %v1645_v2  ;;  %s1649_s6 = sshll.u32 %s207_s26, 9  ;;  %v1654_v3 = vld [vmem:[%s2388_s1 + $0x18] sm:$0x7]  ;;  %v1659_v4 = vld [vmem:[%s2389_s2] ss:$0 sm:$0xff] }
  0x18   : > { %2397 = vst [vmem:[#allocation6_spill] sm:$0xff] %v1654_v3  ;;  %2398 = vst [vmem:[#allocation7_spill] sm:$0xff] %v1659_v4  ;;  %s211_s11 = scalar_select %p210_p11, %s1538_s15, 1 }
  0x19   : > { %s209_s27 = scalar_lea.vmem [#allocation2], %s1649_s6  ;;  %s1668_s28 = smov 0  }
  0x1a   : > { %s1398_s18 = smul.u32 1600, %s211_s11 }
  0x1c   : > { %s1665_s23 = scalar_lea.vmem %s2387_s0, %s1398_s18 }
  0x1d LB: >> { %v246_v5 = vlaneseq  ;;  %s236_s29 = smul.u32 160, %s1550_s28  ;;  %s1391_s4 = sshll.u32 %s1550_s28, 6  ;;  %s1550_s28 = sphi %s1668_s28, %s235_s28  }
  0x1e   : >> { %s1027_s5 = scalar_lea.vmem %s209_s27, %s1391_s4 [#allocation2]  ;;  %s235_s28 = sadd.s32 1, %s1550_s28  }
  0x1f   : >> { %v247_v6 = vshrl.u32 %v246_v5, 7  ;;  %s1675_s30 = scalar_lea.vmem %s1665_s23, %s236_s29  ;;  %p232_p12 = scmp.ge.s32.totalorder %s235_s28, 8  }
  0x20   : >> { %v238_v11 = vld [vmem:[%s1675_s30] sm:$0xff]  ;;  %v1687_v12 = vld [vmem:[%s1675_s30 + $0x10] sm:$0xff]  ;;  %s1397_s7 = sshll.u32 (%p232_p12), %s1538_s15, 13  ;;  %s1051_s11 = sshll.u32 (%p232_p12), %s209_s27, 4  ;;  %s2337_s11 = int_to_ptr.vmem [resolvable:$true] %s1051_s11 }
  0x21   : >> { %v1677_v7 = vsub.s32 0, %v247_v6  ;;  %v1679_v8 = vsub.s32 1, %v247_v6  ;;  %v1681_v9 = vsub.s32 2, %v247_v6  ;;  %v1683_v10 = vsub.s32 3, %v247_v6  ;;  %v1690_v13 = vld [vmem:[%s1675_s30 + $0x20] sm:$0xff]  ;;  %v1699_v17 = vld [vmem:[%s1675_s30 + $0x30] sm:$0xff]  ;;  %s2333_s10 = scalar_lea.hbm (%p232_p12), %s2390_s3, %s1397_s7 }
  0x22   : >> { %v1692_v14 = vsub.s32 4, %v247_v6  ;;  %v1694_v15 = vsub.s32 5, %v247_v6  ;;  %v1696_v16 = vsub.s32 6, %v247_v6  ;;  %v1702_v18 = vld [vmem:[%s1675_s30 + $0x40] sm:$0xff]  ;;  %v1705_v19 = vld [vmem:[%s1675_s30 + $0x50] sm:$0xff]  ;;  %v1736_v30 = vsub.s32 7, %v247_v6 }
  0x23   : >> { %v249_v20 = vrot.slane %v1635_v0, %v1677_v7  ;;  %v277_v21 = vrot.slane %v1635_v0, %v1679_v8  ;;  %v305_v22 = vrot.slane %v1635_v0, %v1681_v9  ;;  %v1715_v23 = vrot.slane %v1635_v0, %v1683_v10  ;;  %v1718_v24 = vld [vmem:[%s1675_s30 + $0x60] sm:$0xff]  ;;  %v1721_v25 = vld [vmem:[%s1675_s30 + $0x70] sm:$0xff]  ;;  %s2341_s18 = scalar_lea.sflag (%p232_p12), [#allocation3], %s207_s26  ;;  %s1464_s19 = scalar_lea.vmem (%p232_p12), %s2337_s11, 8192 }
  0x24   : >> { %v266_v26 = vld [vmem:[%s1675_s30 + $0x1] sm:$0xff]  ;;  %v1726_v27 = vrot.slane %v1635_v0, %v1692_v14  ;;  %v1730_v28 = vrot.slane %v1635_v0, %v1694_v15  ;;  %v1734_v29 = vrot.slane %v1635_v0, %v1696_v16  ;;  %v1742_v35 = vld [vmem:[%s1675_s30 + $0x11] sm:$0xff]  ;;  %p1465_p13 = scmp.ne.s32.totalorder (%p232_p12), %s2337_s11, %s1464_s19  ;;  %s1552_s15 = smov (%p232_p12), [#allocation2]  }
  0x25   : >> { %v250_v31 = vmul.f32 %v249_v20, %v238_v11  ;;  %v251_v32 = vmul.f32 %v249_v20, %v1687_v12  ;;  %v252_v33 = vmul.f32 %v249_v20, %v1690_v13  ;;  %v253_v34 = vmul.f32 %v249_v20, %v1699_v17  ;;  %v1745_v36 = vld [vmem:[%s1675_s30 + $0x21] sm:$0xff]  ;;  %v1748_v37 = vld [vmem:[%s1675_s30 + $0x31] sm:$0xff]  ;;  %s1468_s21 = sshll.u32 (%p232_p12), %s1552_s15, 4  ;;  %s1469_s21 = int_to_ptr.vmem [resolvable:$false] %s1468_s21 }
  0x26   : >> { %v254_v38 = vmul.f32 %v249_v20, %v1702_v18  ;;  %v255_v39 = vmul.f32 %v249_v20, %v1705_v19  ;;  %v256_v40 = vmul.f32 %v249_v20, %v1718_v24  ;;  %v257_v41 = vmul.f32 %v249_v20, %v1721_v25  ;;  %v1755_v42 = vld [vmem:[%s1675_s30 + $0x41] sm:$0xff]  ;;  %v1758_v43 = vld [vmem:[%s1675_s30 + $0x51] sm:$0xff]  ;;  %p1466_p0 = pnand (%p232_p12), %p1465_p13, %p1615_p4  ;;  %s1470_s23 = scalar_lea.vmem (%p232_p12), %s1469_s21, 16384 }
  0x27   : >> { %v1761_v44 = vld [vmem:[%s1675_s30 + $0x61] sm:$0xff]  ;;  %v1764_v45 = vld [vmem:[%s1675_s30 + $0x71] sm:$0xff]  ;;  %v278_v46 = vmul.f32 %v277_v21, %v266_v26  ;;  %v279_v47 = vmul.f32 %v277_v21, %v1742_v35  ;;  %v280_v48 = vmul.f32 %v277_v21, %v1745_v36  ;;  %v281_v49 = vmul.f32 %v277_v21, %v1748_v37  ;;  %p1471_p2 = scmp.lt.s32.totalorder (%p232_p12), %s2337_s11, %s1469_s21  ;;  %p1472_p3 = scmp.lt.s32.totalorder (%p232_p12), %s1470_s23, %s1464_s19 }
  0x28   : >> { %v294_v50 = vld [vmem:[%s1675_s30 + $0x2] sm:$0xff]  ;;  %v1771_v51 = vld [vmem:[%s1675_s30 + $0x12] sm:$0xff]  ;;  %v282_v52 = vmul.f32 %v277_v21, %v1755_v42  ;;  %v283_v53 = vmul.f32 %v277_v21, %v1758_v43  ;;  %v284_v54 = vmul.f32 %v277_v21, %v1761_v44  ;;  %v285_v55 = vmul.f32 %v277_v21, %v1764_v45  ;;  %p1467_p1 = pneg (%p232_p12), %p1466_p0 }
  0x29   : >> { %v1778_v56 = vld [vmem:[%s1675_s30 + $0x22] sm:$0xff]  ;;  %v1781_v57 = vld [vmem:[%s1675_s30 + $0x32] sm:$0xff]  ;;  %v286_v59 = vadd.f32 %v278_v46, %v250_v31  ;;  %v287_v60 = vadd.f32 %v279_v47, %v251_v32  ;;  %v288_v61 = vadd.f32 %v280_v48, %v252_v33  ;;  %v289_v62 = vadd.f32 %v281_v49, %v253_v34  ;;  %p1473_p5 = por (%p232_p12), %p1472_p3, %p1471_p2 }
  0x2a   : >> { %v1784_v58 = vld [vmem:[%s1675_s30 + $0x42] sm:$0xff]  ;;  %v1787_v63 = vld [vmem:[%s1675_s30 + $0x52] sm:$0xff]  ;;  %v290_v11 = vadd.f32 %v282_v52, %v254_v38  ;;  %v291_v20 = vadd.f32 %v283_v53, %v255_v39  ;;  %v292_v21 = vadd.f32 %v284_v54, %v256_v40  ;;  %v293_v26 = vadd.f32 %v285_v55, %v257_v41 }
  0x2b   : >> { %v1790_v5 = vld [vmem:[%s1675_s30 + $0x62] sm:$0xff]  ;;  %v1793_v6 = vld [vmem:[%s1675_s30 + $0x72] sm:$0xff]  ;;  %v306_v4 = vmul.f32 %v305_v22, %v294_v50  ;;  %v307_v3 = vmul.f32 %v305_v22, %v1771_v51  ;;  %v308_v2 = vmul.f32 %v305_v22, %v1778_v56  ;;  %v309_v31 = vmul.f32 %v305_v22, %v1781_v57  ;;  %p1474_p6 = pnand (%p232_p12), %p1473_p5, %p1467_p1 }
  0x2c   : >> { %v310_v32 = vmul.f32 %v305_v22, %v1784_v58  ;;  %v311_v33 = vmul.f32 %v305_v22, %v1787_v63  ;;  %v312_v34 = vmul.f32 %v305_v22, %v1790_v5  ;;  %v313_v46 = vmul.f32 %v305_v22, %v1793_v6  ;;  %v1205_v41 = vld [vmem:[%s1675_s30 + $0x80] sm:$0xff] }
  0x2d   : >> { %v314_v38 = vadd.f32 %v306_v4, %v286_v59  ;;  %v315_v47 = vadd.f32 %v307_v3, %v287_v60  ;;  %v316_v39 = vadd.f32 %v308_v2, %v288_v61  ;;  %v317_v40 = vadd.f32 %v309_v31, %v289_v62 }
  0x2e   : >> { %v318_v48 = vadd.f32 %v310_v32, %v290_v11  ;;  %v319_v49 = vadd.f32 %v311_v33, %v291_v20  ;;  %v320_v50 = vadd.f32 %v312_v34, %v292_v21  ;;  %v321_v52 = vadd.f32 %v313_v46, %v293_v26  ;;  %v1819_v11 = vld [vmem:[%s1675_s30 + $0x81] sm:$0xff] }
  0x2f   : >> { %v336_v53 = vmul.f32 %v1715_v23, %v1687_v12  ;;  %v337_v54 = vmul.f32 %v1715_v23, %v1690_v13  ;;  %v338_v55 = vmul.f32 %v1715_v23, %v1699_v17  ;;  %v339_v3 = vmul.f32 %v1715_v23, %v1702_v18 }
  0x30   : >> { %v340_v2 = vmul.f32 %v1715_v23, %v1705_v19  ;;  %v341_v4 = vmul.f32 %v1715_v23, %v1718_v24  ;;  %v342_v22 = vmul.f32 %v1715_v23, %v1721_v25  ;;  %v343_v12 = vmul.f32 %v1205_v41, %v1715_v23 }
  0x31   : >> { %v344_v59 = vadd.f32 %v336_v53, %v314_v38  ;;  %v345_v60 = vadd.f32 %v337_v54, %v315_v47  ;;  %v346_v61 = vadd.f32 %v338_v55, %v316_v39  ;;  %v347_v62 = vadd.f32 %v339_v3, %v317_v40 }
  0x32   : >> { %v348_v20 = vadd.f32 %v340_v2, %v318_v48  ;;  %v349_v21 = vadd.f32 %v341_v4, %v319_v49  ;;  %v350_v26 = vadd.f32 %v342_v22, %v320_v50  ;;  %v351_v31 = vadd.f32 %v343_v12, %v321_v52  ;;  %v1838_v50 = vld [vmem:[%s1675_s30 + $0x82] sm:$0xff] }
  0x33   : >> { %v364_v32 = vmul.f32 %v1726_v27, %v1742_v35  ;;  %v365_v33 = vmul.f32 %v1726_v27, %v1745_v36  ;;  %v366_v23 = vmul.f32 %v1726_v27, %v1748_v37  ;;  %v367_v34 = vmul.f32 %v1726_v27, %v1755_v42 }
  0x34   : >> { %v368_v46 = vmul.f32 %v1726_v27, %v1758_v43  ;;  %v369_v38 = vmul.f32 %v1726_v27, %v1761_v44  ;;  %v370_v47 = vmul.f32 %v1726_v27, %v1764_v45  ;;  %v371_v35 = vmul.f32 %v1819_v11, %v1726_v27 }
  0x35   : >> { %v372_v39 = vadd.f32 %v364_v32, %v344_v59  ;;  %v373_v40 = vadd.f32 %v365_v33, %v345_v60  ;;  %v374_v48 = vadd.f32 %v366_v23, %v346_v61  ;;  %v375_v49 = vadd.f32 %v367_v34, %v347_v62 }
  0x36   : >> { %v376_v52 = vadd.f32 %v368_v46, %v348_v20  ;;  %v377_v53 = vadd.f32 %v369_v38, %v349_v21  ;;  %v378_v54 = vadd.f32 %v370_v47, %v350_v26  ;;  %v379_v55 = vadd.f32 %v371_v35, %v351_v31  ;;  %v1229_v21 = vld [vmem:[%s1675_s30 + $0x90] sm:$0xff] }
  0x37   : >> { %v392_v3 = vmul.f32 %v1730_v28, %v1771_v51  ;;  %v393_v2 = vmul.f32 %v1730_v28, %v1778_v56  ;;  %v394_v27 = vmul.f32 %v1730_v28, %v1781_v57  ;;  %v395_v4 = vmul.f32 %v1730_v28, %v1784_v58 }
  0x38   : >> { %v396_v22 = vmul.f32 %v1730_v28, %v1787_v63  ;;  %v397_v12 = vmul.f32 %v1730_v28, %v1790_v5  ;;  %v398_v59 = vmul.f32 %v1730_v28, %v1793_v6  ;;  %v399_v51 = vmul.f32 %v1838_v50, %v1730_v28 }
  0x39   : >> { %v400_v60 = vadd.f32 %v392_v3, %v372_v39  ;;  %v401_v61 = vadd.f32 %v393_v2, %v373_v40  ;;  %v402_v62 = vadd.f32 %v394_v27, %v374_v48  ;;  %v403_v20 = vadd.f32 %v395_v4, %v375_v49 }
  0x3a   : >> { %v404_v26 = vadd.f32 %v396_v22, %v376_v52  ;;  %v405_v31 = vadd.f32 %v397_v12, %v377_v53  ;;  %v406_v32 = vadd.f32 %v398_v59, %v378_v54  ;;  %v407_v33 = vadd.f32 %v399_v51, %v379_v55  ;;  %v1237_v54 = vld [vmem:[%s1675_s30 + $0x91] sm:$0xff] }
  0x3b   : >> { %v422_v23 = vmul.f32 %v1734_v29, %v1690_v13  ;;  %v423_v34 = vmul.f32 %v1734_v29, %v1699_v17  ;;  %v424_v46 = vmul.f32 %v1734_v29, %v1702_v18  ;;  %v425_v28 = vmul.f32 %v1734_v29, %v1705_v19 }
  0x3c   : >> { %v426_v38 = vmul.f32 %v1734_v29, %v1718_v24  ;;  %v427_v47 = vmul.f32 %v1734_v29, %v1721_v25  ;;  %v428_v35 = vmul.f32 %v1205_v41, %v1734_v29  ;;  %v429_v13 = vmul.f32 %v1229_v21, %v1734_v29 }
  0x3d   : >> { %v430_v39 = vadd.f32 %v422_v23, %v400_v60  ;;  %v431_v40 = vadd.f32 %v423_v34, %v401_v61  ;;  %v432_v48 = vadd.f32 %v424_v46, %v402_v62  ;;  %v433_v17 = vadd.f32 %v425_v28, %v403_v20  ;;  %v1912_v23 = vld [vmem:[%s1675_s30 + $0xb0] sm:$0xff] }
  0x3e   : >> { %v434_v49 = vadd.f32 %v426_v38, %v404_v26  ;;  %v435_v52 = vadd.f32 %v427_v47, %v405_v31  ;;  %v436_v18 = vadd.f32 %v428_v35, %v406_v32  ;;  %v437_v53 = vadd.f32 %v429_v13, %v407_v33  ;;  %v1246_v33 = vld [vmem:[%s1675_s30 + $0xa0] sm:$0xff] }
  0x3f   : >> { %v449_v19 = vrot.slane %v1635_v0, %v1736_v30  ;;  %v477_v24 = vrot.slane %v1640_v1, %v1677_v7  ;;  %v508_v25 = vrot.slane %v1640_v1, %v1679_v8  ;;  %v1880_v29 = vrot.slane %v1640_v1, %v1681_v9  ;;  %v1924_v47 = vld [vmem:[%s1675_s30 + $0xe0] sm:$0xff] }
  0x40   : >> { %v1884_v41 = vrot.slane %v1640_v1, %v1683_v10  ;;  %v1888_v55 = vrot.slane %v1640_v1, %v1692_v14  ;;  %v1892_v3 = vrot.slane %v1640_v1, %v1694_v15  ;;  %v1896_v2 = vrot.slane %v1640_v1, %v1696_v16 }
  0x41   : >> { %v450_v27 = vmul.f32 %v449_v19, %v1745_v36  ;;  %v451_v4 = vmul.f32 %v449_v19, %v1748_v37  ;;  %v452_v22 = vmul.f32 %v449_v19, %v1755_v42  ;;  %v453_v12 = vmul.f32 %v449_v19, %v1758_v43  ;;  %v1245_v36 = vld [vmem:[%s1675_s30 + $0x92] sm:$0xff] }
  0x42   : >> { %v454_v59 = vmul.f32 %v449_v19, %v1761_v44  ;;  %v455_v51 = vmul.f32 %v449_v19, %v1764_v45  ;;  %v456_v60 = vmul.f32 %v1819_v11, %v449_v19  ;;  %v457_v61 = vmul.f32 %v1237_v54, %v449_v19  ;;  %v1254_v54 = vld [vmem:[%s1675_s30 + $0xa1] sm:$0xff]  ;;  %v1940_v19 = vld [vmem:[%s1675_s30 + $0xb1] sm:$0xff] }
  0x43   : >> { %v458_v62 = vadd.f32 %v450_v27, %v430_v39  ;;  %v459_v20 = vadd.f32 %v451_v4, %v431_v40  ;;  %v460_v21 = vadd.f32 %v452_v22, %v432_v48  ;;  %v461_v26 = vadd.f32 %v453_v12, %v433_v17  ;;  %v1927_v39 = vld [vmem:[%s1675_s30 + $0xf0] sm:$0xff]  ;;  %v1947_v12 = vld [vmem:[%s1675_s30 + $0xc1] sm:$0xff] }
  0x44   : >> { %v462_v37 = vadd.f32 %v454_v59, %v434_v49  ;;  %v463_v42 = vadd.f32 %v455_v51, %v435_v52  ;;  %v464_v43 = vadd.f32 %v456_v60, %v436_v18  ;;  %v465_v31 = vadd.f32 %v457_v61, %v437_v53  ;;  %v1950_v59 = vld [vmem:[%s1675_s30 + $0xd1] sm:$0xff]  ;;  %v1953_v51 = vld [vmem:[%s1675_s30 + $0xe1] sm:$0xff] }
  0x45   : >> { %v478_v44 = vmul.f32 %v477_v24, %v1778_v56  ;;  %v479_v45 = vmul.f32 %v477_v24, %v1781_v57  ;;  %v480_v11 = vmul.f32 %v477_v24, %v1784_v58  ;;  %v481_v32 = vmul.f32 %v477_v24, %v1787_v63  ;;  %v1918_v56 = vld [vmem:[%s1675_s30 + $0xc0] sm:$0xff]  ;;  %v1921_v57 = vld [vmem:[%s1675_s30 + $0xd0] sm:$0xff] }
  0x46   : >> { %v482_v34 = vmul.f32 %v477_v24, %v1790_v5  ;;  %v483_v46 = vmul.f32 %v477_v24, %v1793_v6  ;;  %v484_v28 = vmul.f32 %v1838_v50, %v477_v24  ;;  %v485_v38 = vmul.f32 %v1245_v36, %v477_v24  ;;  %v1930_v5 = vld [vmem:[%s1675_s30 + $0x100] sm:$0xff]  ;;  %v1933_v6 = vld [vmem:[%s1675_s30 + $0x110] sm:$0xff] }
  0x47   : >> { %v486_v58 = vadd.f32 %v478_v44, %v458_v62  ;;  %v487_v63 = vadd.f32 %v479_v45, %v459_v20  ;;  %v488_v35 = vadd.f32 %v480_v11, %v460_v21  ;;  %v489_v13 = vadd.f32 %v481_v32, %v461_v26  ;;  %v1956_v21 = vld [vmem:[%s1675_s30 + $0xf1] sm:$0xff]  ;;  %v1959_v26 = vld [vmem:[%s1675_s30 + $0x101] sm:$0xff] }
  0x48   : >> { %v490_v50 = vadd.f32 %v482_v34, %v462_v37  ;;  %v491_v40 = vadd.f32 %v483_v46, %v463_v42  ;;  %v492_v48 = vadd.f32 %v484_v28, %v464_v43  ;;  %v493_v17 = vadd.f32 %v485_v38, %v465_v31  ;;  %v1962_v36 = vld [vmem:[%s1675_s30 + $0x111] sm:$0xff]  ;;  %v1262_v32 = vld [vmem:[%s1675_s30 + $0xa2] sm:$0xff] }
  0x49   : >> { %v509_v49 = vmul.f32 %v1246_v33, %v508_v25  ;;  %v510_v52 = vmul.f32 %v1912_v23, %v508_v25  ;;  %v511_v18 = vmul.f32 %v1918_v56, %v508_v25  ;;  %v512_v53 = vmul.f32 %v1921_v57, %v508_v25  ;;  %v1973_v33 = vld [vmem:[%s1675_s30 + $0xb2] sm:$0xff] }
  0x4a   : >> { %v513_v24 = vmul.f32 %v1924_v47, %v508_v25  ;;  %v514_v27 = vmul.f32 %v1927_v39, %v508_v25  ;;  %v515_v4 = vmul.f32 %v1930_v5, %v508_v25  ;;  %v516_v22 = vmul.f32 %v1933_v6, %v508_v25 }
  0x4b   : >> { %v517_v60 = vadd.f32 %v509_v49, %v486_v58  ;;  %v518_v61 = vadd.f32 %v510_v52, %v487_v63  ;;  %v519_v62 = vadd.f32 %v511_v18, %v488_v35  ;;  %v520_v20 = vadd.f32 %v512_v53, %v489_v13  ;;  %v1984_v58 = vld [vmem:[%s1675_s30 + $0xc2] sm:$0xff]  ;;  %v1987_v63 = vld [vmem:[%s1675_s30 + $0xd2] sm:$0xff] }
  0x4c   : >> { %v521_v25 = vadd.f32 %v513_v24, %v490_v50  ;;  %v522_v37 = vadd.f32 %v514_v27, %v491_v40  ;;  %v523_v42 = vadd.f32 %v515_v4, %v492_v48  ;;  %v524_v43 = vadd.f32 %v516_v22, %v493_v17  ;;  %v1990_v35 = vld [vmem:[%s1675_s30 + $0xe2] sm:$0xff]  ;;  %v1993_v17 = vld [vmem:[%s1675_s30 + $0xf2] sm:$0xff] }
  0x4d   : >> { %v537_v31 = vmul.f32 %v1254_v54, %v1880_v29  ;;  %v538_v44 = vmul.f32 %v1940_v19, %v1880_v29  ;;  %v539_v45 = vmul.f32 %v1947_v12, %v1880_v29  ;;  %v540_v11 = vmul.f32 %v1950_v59, %v1880_v29  ;;  %v1996_v49 = vld [vmem:[%s1675_s30 + $0x102] sm:$0xff]  ;;  %v1999_v52 = vld [vmem:[%s1675_s30 + $0x112] sm:$0xff] }
  0x4e   : >> { %v541_v34 = vmul.f32 %v1953_v51, %v1880_v29  ;;  %v542_v46 = vmul.f32 %v1956_v21, %v1880_v29  ;;  %v543_v28 = vmul.f32 %v1959_v26, %v1880_v29  ;;  %v544_v38 = vmul.f32 %v1962_v36, %v1880_v29 }
  0x4f   : >> { %v545_v13 = vadd.f32 %v537_v31, %v517_v60  ;;  %v546_v50 = vadd.f32 %v538_v44, %v518_v61  ;;  %v547_v40 = vadd.f32 %v539_v45, %v519_v62  ;;  %v548_v48 = vadd.f32 %v540_v11, %v520_v20  ;;  %v2017_v31 = vld [vmem:[%s1675_s30 + $0x120] sm:$0xff] }
  0x50   : >> { %v549_v18 = vadd.f32 %v541_v34, %v521_v25  ;;  %v550_v53 = vadd.f32 %v542_v46, %v522_v37  ;;  %v551_v29 = vadd.f32 %v543_v28, %v523_v42  ;;  %v552_v54 = vadd.f32 %v544_v38, %v524_v43 }
  0x51   : >> { %v565_v24 = vmul.f32 %v1262_v32, %v1884_v41  ;;  %v566_v27 = vmul.f32 %v1973_v33, %v1884_v41  ;;  %v567_v4 = vmul.f32 %v1984_v58, %v1884_v41  ;;  %v568_v22 = vmul.f32 %v1987_v63, %v1884_v41 }
  0x52   : >> { %v569_v60 = vmul.f32 %v1990_v35, %v1884_v41  ;;  %v570_v61 = vmul.f32 %v1993_v17, %v1884_v41  ;;  %v571_v62 = vmul.f32 %v1996_v49, %v1884_v41  ;;  %v572_v20 = vmul.f32 %v1999_v52, %v1884_v41 }
  0x53   : >> { %v573_v25 = vadd.f32 %v565_v24, %v545_v13  ;;  %v574_v37 = vadd.f32 %v566_v27, %v546_v50  ;;  %v575_v42 = vadd.f32 %v567_v4, %v547_v40  ;;  %v576_v43 = vadd.f32 %v568_v22, %v548_v48 }
  0x54   : >> { %v577_v44 = vadd.f32 %v569_v60, %v549_v18  ;;  %v578_v45 = vadd.f32 %v570_v61, %v550_v53  ;;  %v579_v11 = vadd.f32 %v571_v62, %v551_v29  ;;  %v580_v32 = vadd.f32 %v572_v20, %v552_v54  ;;  %v2036_v29 = vld [vmem:[%s1675_s30 + $0x121] sm:$0xff] }
  0x55   : >> { %v595_v34 = vmul.f32 %v1912_v23, %v1888_v55  ;;  %v596_v46 = vmul.f32 %v1918_v56, %v1888_v55  ;;  %v597_v41 = vmul.f32 %v1921_v57, %v1888_v55  ;;  %v598_v28 = vmul.f32 %v1924_v47, %v1888_v55 }
  0x56   : >> { %v599_v38 = vmul.f32 %v1927_v39, %v1888_v55  ;;  %v600_v13 = vmul.f32 %v1930_v5, %v1888_v55  ;;  %v601_v50 = vmul.f32 %v1933_v6, %v1888_v55  ;;  %v602_v23 = vmul.f32 %v2017_v31, %v1888_v55 }
  0x57   : >> { %v603_v40 = vadd.f32 %v595_v34, %v573_v25  ;;  %v604_v48 = vadd.f32 %v596_v46, %v574_v37  ;;  %v605_v18 = vadd.f32 %v597_v41, %v575_v42  ;;  %v606_v53 = vadd.f32 %v598_v28, %v576_v43 }
  0x58   : >> { %v607_v54 = vadd.f32 %v599_v38, %v577_v44  ;;  %v608_v24 = vadd.f32 %v600_v13, %v578_v45  ;;  %v609_v27 = vadd.f32 %v601_v50, %v579_v11  ;;  %v610_v4 = vadd.f32 %v602_v23, %v580_v32  ;;  %v2055_v45 = vld [vmem:[%s1675_s30 + $0x122] sm:$0xff] }
  0x59   : >> { %v623_v22 = vmul.f32 %v1940_v19, %v1892_v3  ;;  %v624_v60 = vmul.f32 %v1947_v12, %v1892_v3  ;;  %v625_v55 = vmul.f32 %v1950_v59, %v1892_v3  ;;  %v626_v61 = vmul.f32 %v1953_v51, %v1892_v3 }
  0x5a   : >> { %v627_v62 = vmul.f32 %v1956_v21, %v1892_v3  ;;  %v628_v20 = vmul.f32 %v1959_v26, %v1892_v3  ;;  %v629_v25 = vmul.f32 %v1962_v36, %v1892_v3  ;;  %v630_v19 = vmul.f32 %v2036_v29, %v1892_v3 }
  0x5b   : >> { %v631_v37 = vadd.f32 %v623_v22, %v603_v40  ;;  %v632_v42 = vadd.f32 %v624_v60, %v604_v48  ;;  %v633_v43 = vadd.f32 %v625_v55, %v605_v18  ;;  %v634_v44 = vadd.f32 %v626_v61, %v606_v53  ;;  %v1301_v22 = vld [vmem:[%s1675_s30 + $0x130] sm:$0xff]  ;;  %v2399_v55 = vld [vmem:[#allocation5_spill] sm:$0xff] }
  0x5c   : >> { %v635_v11 = vadd.f32 %v627_v62, %v607_v54  ;;  %v636_v32 = vadd.f32 %v628_v20, %v608_v24  ;;  %v637_v34 = vadd.f32 %v629_v25, %v609_v27  ;;  %v638_v46 = vadd.f32 %v630_v19, %v610_v4 }
  0x5d   : >> { %v651_v41 = vmul.f32 %v1973_v33, %v1896_v2  ;;  %v652_v28 = vmul.f32 %v1984_v58, %v1896_v2  ;;  %v653_v3 = vmul.f32 %v1987_v63, %v1896_v2  ;;  %v654_v38 = vmul.f32 %v1990_v35, %v1896_v2 }
  0x5e   : >> { %v655_v13 = vmul.f32 %v1993_v17, %v1896_v2  ;;  %v656_v50 = vmul.f32 %v1996_v49, %v1896_v2  ;;  %v657_v23 = vmul.f32 %v1999_v52, %v1896_v2  ;;  %v658_v33 = vmul.f32 %v2055_v45, %v1896_v2 }
  0x5f   : >> { %v659_v40 = vadd.f32 %v651_v41, %v631_v37  ;;  %v660_v48 = vadd.f32 %v652_v28, %v632_v42  ;;  %v661_v18 = vadd.f32 %v653_v3, %v633_v43  ;;  %v662_v53 = vadd.f32 %v654_v38, %v634_v44  ;;  %v1309_v28 = vld [vmem:[%s1675_s30 + $0x131] sm:$0xff] }
  0x60   : >> { %v663_v54 = vadd.f32 %v655_v13, %v635_v11  ;;  %v664_v24 = vadd.f32 %v656_v50, %v636_v32  ;;  %v665_v27 = vadd.f32 %v657_v23, %v637_v34  ;;  %v666_v4 = vadd.f32 %v658_v33, %v638_v46 }
  0x61   : >> { %v680_v60 = vrot.slane %v1640_v1, %v1736_v30  ;;  %v708_v61 = vrot.slane %v2399_v55, %v1677_v7  ;;  %v736_v62 = vrot.slane %v2399_v55, %v1679_v8  ;;  %v2082_v2 = vrot.slane %v2399_v55, %v1681_v9 }
  0x62   : >> { %v2086_v20 = vrot.slane %v2399_v55, %v1683_v10  ;;  %v2090_v25 = vrot.slane %v2399_v55, %v1692_v14  ;;  %v2094_v19 = vrot.slane %v2399_v55, %v1694_v15  ;;  %v2098_v37 = vrot.slane %v2399_v55, %v1696_v16 }
  0x63   : >> { %v681_v42 = vmul.f32 %v1918_v56, %v680_v60  ;;  %v682_v43 = vmul.f32 %v1921_v57, %v680_v60  ;;  %v683_v10 = vmul.f32 %v1924_v47, %v680_v60  ;;  %v684_v44 = vmul.f32 %v1927_v39, %v680_v60 }
  0x64   : >> { %v685_v11 = vmul.f32 %v1930_v5, %v680_v60  ;;  %v686_v14 = vmul.f32 %v1933_v6, %v680_v60  ;;  %v687_v32 = vmul.f32 %v2017_v31, %v680_v60  ;;  %v688_v15 = vmul.f32 %v1301_v22, %v680_v60 }
  0x65   : >> { %v689_v34 = vadd.f32 %v681_v42, %v659_v40  ;;  %v690_v46 = vadd.f32 %v682_v43, %v660_v48  ;;  %v691_v41 = vadd.f32 %v683_v10, %v661_v18  ;;  %v692_v16 = vadd.f32 %v684_v44, %v662_v53  ;;  %v2134_v42 = vld [vmem:[%s1675_s30 + $0x180] sm:$0xff]  ;;  %v2137_v44 = vld [vmem:[%s1675_s30 + $0x190] sm:$0xff] }
  0x66   : >> { %v693_v3 = vadd.f32 %v685_v11, %v663_v54  ;;  %v694_v56 = vadd.f32 %v686_v14, %v664_v24  ;;  %v695_v57 = vadd.f32 %v687_v32, %v665_v27  ;;  %v696_v38 = vadd.f32 %v688_v15, %v666_v4  ;;  %v1318_v24 = vld [vmem:[%s1675_s30 + $0x140] sm:$0xff]  ;;  %v2122_v27 = vld [vmem:[%s1675_s30 + $0x150] sm:$0xff] }
  0x67   : >> { %v709_v47 = vmul.f32 %v1947_v12, %v708_v61  ;;  %v710_v39 = vmul.f32 %v1950_v59, %v708_v61  ;;  %v711_v5 = vmul.f32 %v1953_v51, %v708_v61  ;;  %v712_v6 = vmul.f32 %v1956_v21, %v708_v61  ;;  %v1317_v12 = vld [vmem:[%s1675_s30 + $0x132] sm:$0xff] }
  0x68   : >> { %v713_v31 = vmul.f32 %v1959_v26, %v708_v61  ;;  %v714_v13 = vmul.f32 %v1962_v36, %v708_v61  ;;  %v715_v50 = vmul.f32 %v2036_v29, %v708_v61  ;;  %v716_v23 = vmul.f32 %v1309_v28, %v708_v61 }
  0x69   : >> { %v717_v33 = vadd.f32 %v709_v47, %v689_v34  ;;  %v718_v40 = vadd.f32 %v710_v39, %v690_v46  ;;  %v719_v48 = vadd.f32 %v711_v5, %v691_v41  ;;  %v720_v18 = vadd.f32 %v712_v6, %v692_v16  ;;  %v1326_v41 = vld [vmem:[%s1675_s30 + $0x141] sm:$0xff]  ;;  %v2154_v16 = vld [vmem:[%s1675_s30 + $0x151] sm:$0xff] }
  0x6a   : >> { %v721_v59 = vadd.f32 %v713_v31, %v693_v3  ;;  %v722_v51 = vadd.f32 %v714_v13, %v694_v56  ;;  %v723_v21 = vadd.f32 %v715_v50, %v695_v57  ;;  %v724_v53 = vadd.f32 %v716_v23, %v696_v38  ;;  %v2165_v38 = vld [vmem:[%s1675_s30 + $0x161] sm:$0xff]  ;;  %v2168_v47 = vld [vmem:[%s1675_s30 + $0x171] sm:$0xff] }
  0x6b   : >> { %v737_v26 = vmul.f32 %v1984_v58, %v736_v62  ;;  %v738_v36 = vmul.f32 %v1987_v63, %v736_v62  ;;  %v739_v29 = vmul.f32 %v1990_v35, %v736_v62  ;;  %v740_v54 = vmul.f32 %v1993_v17, %v736_v62  ;;  %v2128_v58 = vld [vmem:[%s1675_s30 + $0x160] sm:$0xff]  ;;  %v2131_v63 = vld [vmem:[%s1675_s30 + $0x170] sm:$0xff] }
  0x6c   : >> { %v741_v4 = vmul.f32 %v1996_v49, %v736_v62  ;;  %v742_v22 = vmul.f32 %v1999_v52, %v736_v62  ;;  %v743_v60 = vmul.f32 %v2055_v45, %v736_v62  ;;  %v744_v61 = vmul.f32 %v1317_v12, %v736_v62  ;;  %v2140_v49 = vld [vmem:[%s1675_s30 + $0x1a0] sm:$0xff]  ;;  %v2143_v52 = vld [vmem:[%s1675_s30 + $0x1b0] sm:$0xff] }
  0x6d   : >> { %v745_v35 = vadd.f32 %v737_v26, %v717_v33  ;;  %v746_v17 = vadd.f32 %v738_v36, %v718_v40  ;;  %v747_v43 = vadd.f32 %v739_v29, %v719_v48  ;;  %v748_v10 = vadd.f32 %v740_v54, %v720_v18  ;;  %v2171_v39 = vld [vmem:[%s1675_s30 + $0x181] sm:$0xff]  ;;  %v2174_v50 = vld [vmem:[%s1675_s30 + $0x191] sm:$0xff] }
  0x6e   : >> { %v749_v45 = vadd.f32 %v741_v4, %v721_v59  ;;  %v750_v62 = vadd.f32 %v742_v22, %v722_v51  ;;  %v751_v11 = vadd.f32 %v743_v60, %v723_v21  ;;  %v752_v14 = vadd.f32 %v744_v61, %v724_v53  ;;  %v2177_v23 = vld [vmem:[%s1675_s30 + $0x1a1] sm:$0xff]  ;;  %v2180_v33 = vld [vmem:[%s1675_s30 + $0x1b1] sm:$0xff] }
  0x6f   : >> { %v768_v32 = vmul.f32 %v1318_v24, %v2082_v2  ;;  %v769_v15 = vmul.f32 %v2122_v27, %v2082_v2  ;;  %v770_v34 = vmul.f32 %v2128_v58, %v2082_v2  ;;  %v771_v46 = vmul.f32 %v2131_v63, %v2082_v2  ;;  %v1334_v53 = vld [vmem:[%s1675_s30 + $0x142] sm:$0xff]  ;;  %v2191_v26 = vld [vmem:[%s1675_s30 + $0x152] sm:$0xff] }
  0x70   : >> { %v772_v28 = vmul.f32 %v2134_v42, %v2082_v2  ;;  %v773_v3 = vmul.f32 %v2137_v44, %v2082_v2  ;;  %v774_v56 = vmul.f32 %v2140_v49, %v2082_v2  ;;  %v775_v57 = vmul.f32 %v2143_v52, %v2082_v2  ;;  %v2202_v4 = vld [vmem:[%s1675_s30 + $0x162] sm:$0xff]  ;;  %v2205_v22 = vld [vmem:[%s1675_s30 + $0x172] sm:$0xff] }
  0x71   : >> { %v776_v5 = vadd.f32 %v768_v32, %v745_v35  ;;  %v777_v6 = vadd.f32 %v769_v15, %v746_v17  ;;  %v778_v31 = vadd.f32 %v770_v34, %v747_v43  ;;  %v779_v13 = vadd.f32 %v771_v46, %v748_v10  ;;  %v2208_v60 = vld [vmem:[%s1675_s30 + $0x182] sm:$0xff]  ;;  %v2211_v10 = vld [vmem:[%s1675_s30 + $0x192] sm:$0xff] }
  0x72   : >> { %v780_v2 = vadd.f32 %v772_v28, %v749_v45  ;;  %v781_v40 = vadd.f32 %v773_v3, %v750_v62  ;;  %v782_v48 = vadd.f32 %v774_v56, %v751_v11  ;;  %v783_v18 = vadd.f32 %v775_v57, %v752_v14  ;;  %v2214_v45 = vld [vmem:[%s1675_s30 + $0x1a2] sm:$0xff]  ;;  %v2217_v62 = vld [vmem:[%s1675_s30 + $0x1b2] sm:$0xff] }
  0x73   : >> { %v796_v12 = vmul.f32 %v1326_v41, %v2086_v20  ;;  %v797_v59 = vmul.f32 %v2154_v16, %v2086_v20  ;;  %v798_v51 = vmul.f32 %v2165_v38, %v2086_v20  ;;  %v799_v21 = vmul.f32 %v2168_v47, %v2086_v20 }
  0x74   : >> { %v800_v36 = vmul.f32 %v2171_v39, %v2086_v20  ;;  %v801_v29 = vmul.f32 %v2174_v50, %v2086_v20  ;;  %v802_v54 = vmul.f32 %v2177_v23, %v2086_v20  ;;  %v803_v24 = vmul.f32 %v2180_v33, %v2086_v20 }
  0x75   : >> { %v804_v61 = vadd.f32 %v796_v12, %v776_v5  ;;  %v805_v35 = vadd.f32 %v797_v59, %v777_v6  ;;  %v806_v17 = vadd.f32 %v798_v51, %v778_v31  ;;  %v807_v43 = vadd.f32 %v799_v21, %v779_v13 }
  0x76   : >> { %v808_v11 = vadd.f32 %v800_v36, %v780_v2  ;;  %v809_v14 = vadd.f32 %v801_v29, %v781_v40  ;;  %v810_v20 = vadd.f32 %v802_v54, %v782_v48  ;;  %v811_v32 = vadd.f32 %v803_v24, %v783_v18  ;;  %v2235_v2 = vld [vmem:[%s1675_s30 + $0x1c0] sm:$0xff] }
  0x77   : >> { %v824_v15 = vmul.f32 %v1334_v53, %v2090_v25  ;;  %v825_v34 = vmul.f32 %v2191_v26, %v2090_v25  ;;  %v826_v46 = vmul.f32 %v2202_v4, %v2090_v25  ;;  %v827_v41 = vmul.f32 %v2205_v22, %v2090_v25 }
  0x78   : >> { %v828_v28 = vmul.f32 %v2208_v60, %v2090_v25  ;;  %v829_v3 = vmul.f32 %v2211_v10, %v2090_v25  ;;  %v830_v56 = vmul.f32 %v2214_v45, %v2090_v25  ;;  %v831_v57 = vmul.f32 %v2217_v62, %v2090_v25 }
  0x79   : >> { %v832_v5 = vadd.f32 %v824_v15, %v804_v61  ;;  %v833_v6 = vadd.f32 %v825_v34, %v805_v35  ;;  %v834_v31 = vadd.f32 %v826_v46, %v806_v17  ;;  %v835_v13 = vadd.f32 %v827_v41, %v807_v43  ;;  %v2254_v17 = vld [vmem:[%s1675_s30 + $0x1c1] sm:$0xff] }
  0x7a   : >> { %v836_v40 = vadd.f32 %v828_v28, %v808_v11  ;;  %v837_v48 = vadd.f32 %v829_v3, %v809_v14  ;;  %v838_v18 = vadd.f32 %v830_v56, %v810_v20  ;;  %v839_v12 = vadd.f32 %v831_v57, %v811_v32 }
  0x7b   : >> { %v854_v59 = vmul.f32 %v2122_v27, %v2094_v19  ;;  %v855_v51 = vmul.f32 %v2128_v58, %v2094_v19  ;;  %v856_v25 = vmul.f32 %v2131_v63, %v2094_v19  ;;  %v857_v21 = vmul.f32 %v2134_v42, %v2094_v19 }
  0x7c   : >> { %v858_v53 = vmul.f32 %v2137_v44, %v2094_v19  ;;  %v859_v36 = vmul.f32 %v2140_v49, %v2094_v19  ;;  %v860_v29 = vmul.f32 %v2143_v52, %v2094_v19  ;;  %v861_v27 = vmul.f32 %v2235_v2, %v2094_v19 }
  0x7d   : >> { %v862_v54 = vadd.f32 %v854_v59, %v832_v5  ;;  %v863_v24 = vadd.f32 %v855_v51, %v833_v6  ;;  %v864_v61 = vadd.f32 %v856_v25, %v834_v31  ;;  %v865_v35 = vadd.f32 %v857_v21, %v835_v13 }
  0x7e   : >> { %v866_v43 = vadd.f32 %v858_v53, %v836_v40  ;;  %v867_v11 = vadd.f32 %v859_v36, %v837_v48  ;;  %v868_v14 = vadd.f32 %v860_v29, %v838_v18  ;;  %v869_v20 = vadd.f32 %v861_v27, %v839_v12  ;;  %v2273_v40 = vld [vmem:[%s1675_s30 + $0x1c2] sm:$0xff] }
  0x7f   : >> { %v882_v32 = vmul.f32 %v2154_v16, %v2098_v37  ;;  %v883_v15 = vmul.f32 %v2165_v38, %v2098_v37  ;;  %v884_v19 = vmul.f32 %v2168_v47, %v2098_v37  ;;  %v885_v34 = vmul.f32 %v2171_v39, %v2098_v37  ;;  %v2400_v12 = vld [vmem:[#allocation6_spill] sm:$0xff] }
  0x80   : >> { %v886_v46 = vmul.f32 %v2174_v50, %v2098_v37  ;;  %v887_v41 = vmul.f32 %v2177_v23, %v2098_v37  ;;  %v888_v28 = vmul.f32 %v2180_v33, %v2098_v37  ;;  %v889_v16 = vmul.f32 %v2254_v17, %v2098_v37 }
  0x81   : >> { %v890_v3 = vadd.f32 %v882_v32, %v862_v54  ;;  %v891_v56 = vadd.f32 %v883_v15, %v863_v24  ;;  %v892_v57 = vadd.f32 %v884_v19, %v864_v61  ;;  %v893_v5 = vadd.f32 %v885_v34, %v865_v35  ;;  %v1373_v61 = vld [vmem:[%s1675_s30 + $0x1d0] sm:$0xff] }
  0x82   : >> { %v894_v6 = vadd.f32 %v886_v46, %v866_v43  ;;  %v895_v31 = vadd.f32 %v887_v41, %v867_v11  ;;  %v896_v13 = vadd.f32 %v888_v28, %v868_v14  ;;  %v909_v48 = vrot.slane %v2399_v55, %v1736_v30 }
  0x83   : >> { %v897_v18 = vadd.f32 %v889_v16, %v869_v20  ;;  %v939_v59 = vrot.slane %v2400_v12, %v1677_v7  ;;  %v967_v37 = vrot.slane %v2400_v12, %v1679_v8  ;;  %v995_v51 = vrot.slane %v2400_v12, %v1681_v9 }
  0x84   : >> { %v910_v25 = vmul.f32 %v2191_v26, %v909_v48  ;;  %v911_v21 = vmul.f32 %v2202_v4, %v909_v48  ;;  %v912_v53 = vmul.f32 %v2205_v22, %v909_v48  ;;  %v913_v36 = vmul.f32 %v2208_v60, %v909_v48 }
  0x85   : >> { %v914_v30 = vmul.f32 %v2211_v10, %v909_v48  ;;  %v915_v29 = vmul.f32 %v2214_v45, %v909_v48  ;;  %v916_v7 = vmul.f32 %v2217_v62, %v909_v48  ;;  %v917_v27 = vmul.f32 %v2273_v40, %v909_v48 }
  0x86   : >> { %v918_v8 = vadd.f32 %v910_v25, %v890_v3  ;;  %v919_v54 = vadd.f32 %v911_v21, %v891_v56  ;;  %v920_v24 = vadd.f32 %v912_v53, %v892_v57  ;;  %v921_v9 = vadd.f32 %v913_v36, %v893_v5  ;;  %v1381_v57 = vld [vmem:[%s1675_s30 + $0x1d1] sm:$0xff] }
  0x87   : >> { %v922_v26 = vadd.f32 %v914_v30, %v894_v6  ;;  %v923_v35 = vadd.f32 %v915_v29, %v895_v31  ;;  %v924_v43 = vadd.f32 %v916_v7, %v896_v13  ;;  %v925_v11 = vadd.f32 %v917_v27, %v897_v18  ;;  %v1389_v53 = vld [vmem:[%s1675_s30 + $0x1d2] sm:$0xff] }
  0x88   : >> { %v940_v14 = vmul.f32 %v2128_v58, %v939_v59  ;;  %v941_v20 = vmul.f32 %v2131_v63, %v939_v59  ;;  %v942_v32 = vmul.f32 %v2134_v42, %v939_v59  ;;  %v943_v15 = vmul.f32 %v2137_v44, %v939_v59 }
  0x89   : >> { %v944_v19 = vmul.f32 %v2140_v49, %v939_v59  ;;  %v945_v34 = vmul.f32 %v2143_v52, %v939_v59  ;;  %v946_v46 = vmul.f32 %v2235_v2, %v939_v59  ;;  %v947_v41 = vmul.f32 %v1373_v61, %v939_v59 }
  0x8a   : >> { %v948_v28 = vadd.f32 %v940_v14, %v918_v8  ;;  %v949_v16 = vadd.f32 %v941_v20, %v919_v54  ;;  %v950_v3 = vadd.f32 %v942_v32, %v920_v24  ;;  %v951_v56 = vadd.f32 %v943_v15, %v921_v9 }
  0x8b   : >> { %v952_v5 = vadd.f32 %v944_v19, %v922_v26  ;;  %v953_v58 = vadd.f32 %v945_v34, %v923_v35  ;;  %v954_v63 = vadd.f32 %v946_v46, %v924_v43  ;;  %v955_v6 = vadd.f32 %v947_v41, %v925_v11 }
  0x8c   : >> { %v968_v42 = vmul.f32 %v2165_v38, %v967_v37  ;;  %v969_v44 = vmul.f32 %v2168_v47, %v967_v37  ;;  %v970_v49 = vmul.f32 %v2171_v39, %v967_v37  ;;  %v971_v52 = vmul.f32 %v2174_v50, %v967_v37 }
  0x8d   : >> { %v972_v2 = vmul.f32 %v2177_v23, %v967_v37  ;;  %v973_v31 = vmul.f32 %v2180_v33, %v967_v37  ;;  %v974_v13 = vmul.f32 %v2254_v17, %v967_v37  ;;  %v975_v48 = vmul.f32 %v1381_v57, %v967_v37 }
  0x8e   : >> { %v976_v18 = vadd.f32 %v968_v42, %v948_v28  ;;  %v977_v59 = vadd.f32 %v969_v44, %v949_v16  ;;  %v978_v25 = vadd.f32 %v970_v49, %v950_v3  ;;  %v979_v21 = vadd.f32 %v971_v52, %v951_v56 }
  0x8f   : >> { %v980_v38 = vadd.f32 %v972_v2, %v952_v5  ;;  %v981_v36 = vadd.f32 %v973_v31, %v953_v58  ;;  %v982_v47 = vadd.f32 %v974_v13, %v954_v63  ;;  %v983_v30 = vadd.f32 %v975_v48, %v955_v6 }
  0x90   : >> { %v996_v39 = vmul.f32 %v2202_v4, %v995_v51  ;;  %v997_v50 = vmul.f32 %v2205_v22, %v995_v51  ;;  %v998_v23 = vmul.f32 %v2208_v60, %v995_v51  ;;  %v999_v33 = vmul.f32 %v2211_v10, %v995_v51  ;;  %v2401_v60 = vld [vmem:[#allocation7_spill] sm:$0xff] }
  0x91   : >> { %v1000_v17 = vmul.f32 %v2214_v45, %v995_v51  ;;  %v1001_v37 = vmul.f32 %v2217_v62, %v995_v51  ;;  %v1002_v29 = vmul.f32 %v2273_v40, %v995_v51  ;;  %v1003_v7 = vmul.f32 %v1389_v53, %v995_v51 }
  0x92   : >> { %v1004_v27 = vadd.f32 %v996_v39, %v976_v18  ;;  %v1005_v8 = vadd.f32 %v997_v50, %v977_v59  ;;  %v1006_v54 = vadd.f32 %v998_v23, %v978_v25  ;;  %v1007_v24 = vadd.f32 %v999_v33, %v979_v21 }
  0x93   : >> { %v1008_v4 = vadd.f32 %v1000_v17, %v980_v38  ;;  %v1009_v9 = vadd.f32 %v1001_v37, %v981_v36  ;;  %v1010_v22 = vadd.f32 %v1002_v29, %v982_v47  ;;  %v1011_v61 = vadd.f32 %v1003_v7, %v983_v30  ;;  %234 = sbr.rel (!%p232_p12) target bundleno = 29 (0x1d), region = 90 }
  0x94   : >> { %v1018_v10 = vadd.f32 %v2401_v60, %v1004_v27  ;;  %v1019_v26 = vadd.f32 %v2401_v60, %v1005_v8  ;;  %v1020_v45 = vadd.f32 %v2401_v60, %v1006_v54  ;;  %v1021_v62 = vadd.f32 %v2401_v60, %v1007_v24 }
  0x95   : >> { %v1022_v40 = vadd.f32 %v2401_v60, %v1008_v4  ;;  %v1023_v51 = vadd.f32 %v2401_v60, %v1009_v9  ;;  %v1024_v35 = vadd.f32 %v2401_v60, %v1010_v22  ;;  %v1025_v43 = vadd.f32 %v2401_v60, %v1011_v61 }
  0x96   : >> { %1028 = vst [vmem:[%s1027_s5] sm:$0xff] %v1018_v10  ;;  %1029 = vst [vmem:[%s1027_s5 + $0x8] sm:$0xff] %v1019_v26 }
  0x97   : >> { %1030 = vst [vmem:[%s1027_s5 + $0x10] sm:$0xff] %v1020_v45  ;;  %1031 = vst [vmem:[%s1027_s5 + $0x18] sm:$0xff] %v1021_v62 }
  0x98   : >> { %1032 = vst [vmem:[%s1027_s5 + $0x20] sm:$0xff] %v1022_v40  ;;  %1033 = vst [vmem:[%s1027_s5 + $0x28] sm:$0xff] %v1023_v51 }
  0x99   : >> { %1034 = vst [vmem:[%s1027_s5 + $0x30] sm:$0xff] %v1024_v35  ;;  %1035 = vst [vmem:[%s1027_s5 + $0x38] sm:$0xff] %v1025_v43 }
  0x9a   : > { %1477 = shalt.err (!%p1474_p6)
}
  0x9b   : > { %s1478_s26 = scalar_lea.hbm %s2333_s10, 8192  ;;  %s1482_s28 = scalar_lea.hbm %s2390_s3, 16384 }
  0x9c   : > { %p1479_p7 = scmp.ne.s32.totalorder %s2333_s10, %s1478_s26  ;;  %p1483_p11 = scmp.lt.u32.totalorder %s2333_s10, %s2390_s3 }
  0x9d   : > { %p1484_p12 = scmp.lt.u32.totalorder %s1482_s28, %s1478_s26  ;;  %p1486_p0 = scmp.lt.u32.totalorder %s1478_s26, %s2333_s10 }
  0x9e   : > { %p1480_p9 = pnand %p1479_p7, %p1615_p4 }
  0x9f   : > { %p1485_p13 = por %p1484_p12, %p1483_p11 }
  0xa0   : > { %p1481_p10 = pneg %p1480_p9 }
  0xa1   : > { %p1487_p1 = por %p1486_p0, %p1485_p13 }
  0xa3   : > { %p1488_p2 = pnand %p1487_p1, %p1481_p10 }
  0xa5   : > { %1491 = shalt.err (!%p1488_p2)
}
  0xa6   : > { %s1553_s4 = smov 128   ;;  %s1554_s5 = smov 8  }
  0xa7   : > { %1399 = dma.vmem_to_hbm [thread:$0]  (%p1615_p4), %s2337_s11, 8192, %s2333_s10, %s2341_s18, %s1553_s4, %s1553_s4, %s1554_s5  }
  0xa8 PF: > { %p1405_p3 = scmp.ge.s32.totalorder %s1546_s17, 2  ;;  %s1066_s7 = sand.u32 1, %s1526_s12  }
  0xa9   : > { %s1067_s8 = scalar_lea.sflag [#allocation3], %s1066_s7 }
  0xaa   : > { %p1402_p5 = pnand %p1405_p3, %p1622_p8 }
  0xac   : > { %1521 = dma.done.wait (!%p1402_p5), %s1067_s8, 8192  }
  0xad   : > { %1523 = vsyncadd (!%p1402_p5), %s1067_s8, 4294959104  ;;  %s16_s17 = sadd.s32 1, %s1546_s17   ;;  %s2402_s12 = smov %s1530_s13 }
  0xae   : > { %p13_p6 = scmp.ge.s32.totalorder %s16_s17, 4   ;;  %s2403_s13 = smov %s1534_s14 }
  0xaf   : > { %s2404_s14 = smov %s1628_s25  ;;  %s2405_s15 = smov %s1542_s16 }
  0xb0   : > { %s2406_s16 = smov %s2408_s20  ;;  %15 = sbr.rel (!%p13_p6) target bundleno = 4 (0x4), region = 101 }
  0xb7   :  { %1072 = vsyncpa [#allocation3], 1 }
  0xb8   :  { %1074 = vsyncpa [#allocation3 + $0x1], 1 }

</bundles_post_ra>
